<compile_context>
chip_gen: v5e
topology: v5e:2x2
jax: 0.10.0
libtpu: 0.0.40
codegen_flags: <defaults>
</compile_context>

<pallas_src>
import jax
import jax.numpy as jnp
from jax.experimental import pallas as pl
from jax.experimental.pallas import tpu as pltpu

n_embd = 32
FOLD = 4            # tokens folded per 128-lane row (4 * 32 = 128)
TILE_M_MAX = 4096   # folded rows per grid step (= 16384 tokens, ~2 MiB f32 x-tile)


def ffn_kernel(x_ref, w1_ref, b1_ref, w2_ref, b2_ref, o_ref):
    # Fused in VMEM: matmul -> bias -> ReLU -> matmul -> bias (MXU + VPU).
    x = x_ref[...]
    h = jnp.dot(x, w1_ref[...],
                preferred_element_type=jnp.float32,
                precision=jax.lax.Precision.HIGHEST) + b1_ref[...]
    h = jnp.maximum(h, 0.0)
    y = jnp.dot(h, w2_ref[...],
                preferred_element_type=jnp.float32,
                precision=jax.lax.Precision.HIGHEST) + b2_ref[...]
    o_ref[...] = y.astype(o_ref.dtype)


@jax.jit
def feed_forward(x, w1, b1, w2, b2):
    """x: (B, T, C) float32. Returns (B, T, C). Same math as the PyTorch module."""
    B, T, C = x.shape
    H = w1.shape[1]
    M = B * T

    # ---- Lane-dense folding: 4 tokens per 128-lane row. ----
    x2d = x.reshape(M, C)
    pad_rows = (-M) % FOLD
    if pad_rows:  # rare; at most 3 tiny rows (B*T is usually a multiple of 4)
        x2d = jnp.pad(x2d, ((0, pad_rows), (0, 0)))
    Mp = M + pad_rows
    Mf = Mp // FOLD
    Cf = FOLD * C          # 128 lanes
    Hf = FOLD * H          # 512
    xf = x2d.reshape(Mf, Cf)

    # Block-diagonal weights + tiled biases: per-token math is unchanged, the
    # extra zero-block FLOPs are free (kernel is HBM-bound, far under MXU roof).
    eye = jnp.eye(FOLD, dtype=w1.dtype)
    w1f = jnp.kron(eye, w1)            # (Cf, Hf) = (128, 512)
    w2f = jnp.kron(eye, w2)            # (Hf, Cf) = (512, 128)
    b1f = jnp.tile(b1, (1, FOLD))      # (1, Hf)
    b2f = jnp.tile(b2, (1, FOLD))      # (1, Cf)

    # Row tile: full array for small inputs, else 4096-row tiles (multiple of 8).
    tile_m = Mf if Mf <= TILE_M_MAX else TILE_M_MAX
    grid = (pl.cdiv(Mf, tile_m),)      # partial tail block masked by Pallas

    # Advisory scheduling hint (folded shapes).
    cost = pl.CostEstimate(
        flops=4 * Mf * Cf * Hf,
        transcendentals=0,
        bytes_accessed=(2 * Mf * Cf + Cf * Hf + Hf + Hf * Cf + Cf) * 4,
    )

    outf = pl.pallas_call(
        ffn_kernel,
        out_shape=jax.ShapeDtypeStruct((Mf, Cf), x.dtype),
        grid=grid,
        in_specs=[
            # x: tiled along folded rows -> pipelined (double-buffered) by Pallas.
            pl.BlockSpec((tile_m, Cf), lambda i: (i, 0)),
            # weights & biases: constant index maps -> VMEM-resident, fetched once.
            pl.BlockSpec((Cf, Hf), lambda i: (0, 0)),
            pl.BlockSpec((1, Hf), lambda i: (0, 0)),
            pl.BlockSpec((Hf, Cf), lambda i: (0, 0)),
            pl.BlockSpec((1, Cf), lambda i: (0, 0)),
        ],
        out_specs=pl.BlockSpec((tile_m, Cf), lambda i: (i, 0)),
        compiler_params=pltpu.CompilerParams(
            dimension_semantics=("parallel",),  # independent row tiles (2 TCs on v7x)
        ),
        cost_estimate=cost,
    )(xf, w1f, b1f, w2f, b2f)

    out2d = outf.reshape(Mp, C)
    if pad_rows:
        out2d = out2d[:M]
    return out2d.reshape(B, T, C)


def init_params(key, n_embd):
    # Deterministic synthetic params. PyTorch nn.Linear stores W as (out, in);
    # we keep the math-equivalent (in, out) layout so the kernel computes x @ W + b.
    k1, k2, k3, k4 = jax.random.split(key, 4)
    hidden = 4 * n_embd
    bound1 = 1.0 / jnp.sqrt(n_embd)
    bound2 = 1.0 / jnp.sqrt(hidden)
    w1 = jax.random.uniform(k1, (n_embd, hidden), jnp.float32, -bound1, bound1)
    b1 = jax.random.uniform(k2, (1, hidden), jnp.float32, -bound1, bound1)
    w2 = jax.random.uniform(k3, (hidden, n_embd), jnp.float32, -bound2, bound2)
    b2 = jax.random.uniform(k4, (1, n_embd), jnp.float32, -bound2, bound2)
    return w1, b1, w2, b2


if __name__ == "__main__":
    key = jax.random.PRNGKey(0)
    kx, kp = jax.random.split(key)

    B, T, C = 2, 8, n_embd
    x = jax.random.normal(kx, (B, T, C), dtype=jnp.float32)
    w1, b1, w2, b2 = init_params(kp, n_embd)

    out = feed_forward(x, w1, b1, w2, b2)
    out = jax.block_until_ready(out)

    # Reference check in plain JAX (same math as the PyTorch module, full f32).
    hp = jax.lax.Precision.HIGHEST
    ref = jnp.dot(x.reshape(B * T, C), w1, precision=hp) + b1
    ref = jnp.dot(jnp.maximum(ref, 0.0), w2, precision=hp) + b2
    ref = ref.reshape(B, T, C)

    assert out.shape == (B, T, C)
    assert jnp.allclose(out, ref, atol=1e-5, rtol=1e-5)

    print("KERNEL_OK")
</pallas_src>

<mosaic_0001>
module attributes {stable_mosaic.version = 11 : i64} {
  func.func @ffn_kernel(%arg0: i32, %arg1: memref<4x128xf32, #tpu.memory_space<vmem>>, %arg2: memref<128x512xf32, #tpu.memory_space<vmem>>, %arg3: memref<1x512xf32, #tpu.memory_space<vmem>>, %arg4: memref<512x128xf32, #tpu.memory_space<vmem>>, %arg5: memref<1x128xf32, #tpu.memory_space<vmem>>, %arg6: memref<4x128xf32, #tpu.memory_space<vmem>>) attributes {dimension_semantics = [#tpu.dimension_semantics<parallel>], iteration_bounds = array<i64: 1>, scalar_prefetch = 0 : i64, scratch_operands = 0 : i64, tpu.core_type = #tpu.core_type<tc>, window_params = [{transform_indices = @transform_0, window_bounds = array<i64: 4, 128>}, {pipeline_mode = #tpu.pipeline_mode<synchronous>, transform_indices = @transform_1, window_bounds = array<i64: 128, 512>}, {pipeline_mode = #tpu.pipeline_mode<synchronous>, transform_indices = @transform_2, window_bounds = array<i64: 1, 512>}, {pipeline_mode = #tpu.pipeline_mode<synchronous>, transform_indices = @transform_3, window_bounds = array<i64: 512, 128>}, {pipeline_mode = #tpu.pipeline_mode<synchronous>, transform_indices = @transform_4, window_bounds = array<i64: 1, 128>}, {transform_indices = @transform_5, window_bounds = array<i64: 4, 128>}]} {
    %c0 = arith.constant 0 : index
    %c0_0 = arith.constant 0 : index
    %0 = vector.load %arg1[%c0, %c0_0] : memref<4x128xf32, #tpu.memory_space<vmem>>, vector<4x128xf32>
    %c0_1 = arith.constant 0 : index
    %c0_2 = arith.constant 0 : index
    %1 = vector.load %arg2[%c0_1, %c0_2] : memref<128x512xf32, #tpu.memory_space<vmem>>, vector<128x512xf32>
    %cst = arith.constant dense<0.000000e+00> : vector<4x512xf32>
    %2 = tpu.matmul %0, %1, %cst {dimension_numbers = #tpu.dot_dimension_numbers<[1], [0], [0], [1], [0, 0, 1, 1], [], []>, precision = #tpu.contract_precision<fp32>} : vector<4x128xf32>, vector<128x512xf32>, vector<4x512xf32> -> vector<4x512xf32>
    %c0_3 = arith.constant 0 : index
    %c0_4 = arith.constant 0 : index
    %3 = vector.load %arg3[%c0_3, %c0_4] : memref<1x512xf32, #tpu.memory_space<vmem>>, vector<1x512xf32>
    %4 = vector.broadcast %3 : vector<1x512xf32> to vector<4x512xf32>
    %5 = arith.addf %2, %4 : vector<4x512xf32>
    %cst_5 = arith.constant 0.000000e+00 : f32
    %6 = vector.broadcast %cst_5 : f32 to vector<4x512xf32>
    %7 = arith.maximumf %5, %6 : vector<4x512xf32>
    %c0_6 = arith.constant 0 : index
    %c0_7 = arith.constant 0 : index
    %8 = vector.load %arg4[%c0_6, %c0_7] : memref<512x128xf32, #tpu.memory_space<vmem>>, vector<512x128xf32>
    %cst_8 = arith.constant dense<0.000000e+00> : vector<4x128xf32>
    %9 = tpu.matmul %7, %8, %cst_8 {dimension_numbers = #tpu.dot_dimension_numbers<[1], [0], [0], [1], [0, 0, 1, 1], [], []>, precision = #tpu.contract_precision<fp32>} : vector<4x512xf32>, vector<512x128xf32>, vector<4x128xf32> -> vector<4x128xf32>
    %c0_9 = arith.constant 0 : index
    %c0_10 = arith.constant 0 : index
    %10 = vector.load %arg5[%c0_9, %c0_10] : memref<1x128xf32, #tpu.memory_space<vmem>>, vector<1x128xf32>
    %11 = vector.broadcast %10 : vector<1x128xf32> to vector<4x128xf32>
    %12 = arith.addf %9, %11 : vector<4x128xf32>
    %c0_11 = arith.constant 0 : index
    %c0_12 = arith.constant 0 : index
    %13 = vector.load %arg6[%c0_11, %c0_12] : memref<4x128xf32, #tpu.memory_space<vmem>>, vector<4x128xf32>
    tpu.vector_store %arg6[%c0_11, %c0_12], %12 {strides = array<i32>} : memref<4x128xf32, #tpu.memory_space<vmem>>, vector<4x128xf32>,
    return
  }
  func.func @transform_0(%arg0: i32) -> (i32, i32) {
    %c0_i32 = arith.constant 0 : i32
    %c0_i32_0 = arith.constant 0 : i32
    return %arg0, %c0_i32 : i32, i32
  }
  func.func @transform_1(%arg0: i32) -> (i32, i32) {
    %c0_i32 = arith.constant 0 : i32
    %c0_i32_0 = arith.constant 0 : i32
    %c0_i32_1 = arith.constant 0 : i32
    return %c0_i32, %c0_i32_0 : i32, i32
  }
  func.func @transform_2(%arg0: i32) -> (i32, i32) {
    %c0_i32 = arith.constant 0 : i32
    %c0_i32_0 = arith.constant 0 : i32
    %c0_i32_1 = arith.constant 0 : i32
    return %c0_i32, %c0_i32_0 : i32, i32
  }
  func.func @transform_3(%arg0: i32) -> (i32, i32) {
    %c0_i32 = arith.constant 0 : i32
    %c0_i32_0 = arith.constant 0 : i32
    %c0_i32_1 = arith.constant 0 : i32
    return %c0_i32, %c0_i32_0 : i32, i32
  }
  func.func @transform_4(%arg0: i32) -> (i32, i32) {
    %c0_i32 = arith.constant 0 : i32
    %c0_i32_0 = arith.constant 0 : i32
    %c0_i32_1 = arith.constant 0 : i32
    return %c0_i32, %c0_i32_0 : i32, i32
  }
  func.func @transform_5(%arg0: i32) -> (i32, i32) {
    %c0_i32 = arith.constant 0 : i32
    %c0_i32_0 = arith.constant 0 : i32
    return %arg0, %c0_i32 : i32, i32
  }
}

</mosaic_0001>

<bundles_post_ra>
// kernel: feed_forward.1
= control target key start
LH: loop header
LB: loop body
LE: loop exit
PB: predicated region body
PF: predicated region fallthrough
CT: control target
= control target key end

     0   :  { %s5358_s1 = inlined_call_operand.vmem [shape: f32[128,512], index: 1, kind: input, shape index: {}]   ;;  %s5359_s0 = inlined_call_operand.vmem [shape: f32[4,128], index: 0, kind: input, shape index: {}]   ;;  %s5360_s2 = inlined_call_operand.vmem [shape: f32[1,512], index: 2, kind: input, shape index: {}]   ;;  %s5361_s3 = inlined_call_operand.vmem [shape: f32[512,128], index: 3, kind: input, shape index: {}]   ;;  %s5362_s4 = inlined_call_operand.vmem [shape: f32[1,128], index: 4, kind: input, shape index: {}]   ;;  %s5363_s5 = inlined_call_operand.vmem [shape: f32[4,128], index: 5, kind: output, shape index: {}]  }
   0x1   :  { %v81_v0 = vld [vmem:[%s5358_s1 + $0x1e0] sm:$0xff]  ;;  %v82_v56 = vld [vmem:[%s5358_s1 + $0x1e8] sm:$0xff] }
   0x2   :  { %v77_v1 = vld [vmem:[%s5358_s1 + $0x1c0] sm:$0xff]  ;;  %v2941_v3 = vand.u32 4294901760, %v81_v0  ;;  %v78_v60 = vld [vmem:[%s5358_s1 + $0x1c8] sm:$0xff] }
   0x3   :  { %v73_v2 = vld [vmem:[%s5358_s1 + $0x1a0] sm:$0xff]  ;;  %v2943_v4 = vand.u32 4294901760, %v77_v1 }
   0x4   :  { %v2945_v5 = vand.u32 4294901760, %v73_v2  ;;  %v69_v6 = vld [vmem:[%s5358_s1 + $0x180] sm:$0xff]  ;;  %96 = vmatpush.msra.mxu0 %v2941_v3  ;;  %292 = vmatpush.msra.mxu3 %v2941_v3  ;;  %v2971_v14 = vsub.f32 %v81_v0, %v2941_v3 }
   0x5   :  { %v65_v7 = vld [vmem:[%s5358_s1 + $0x160] sm:$0xff]  ;;  %v2956_v9 = vand.u32 4294901760, %v69_v6  ;;  %v2974_v15 = vsub.f32 %v77_v1, %v2943_v4 }
   0x6   :  { %v61_v8 = vld [vmem:[%s5358_s1 + $0x140] sm:$0xff]  ;;  %v2958_v10 = vand.u32 4294901760, %v65_v7  ;;  %v2977_v16 = vsub.f32 %v73_v2, %v2945_v5  ;;  %98 = vmatpush.msra.mxu0 %v2943_v4  ;;  %239 = vmatpush.msra.mxu2 %v2971_v14  ;;  %v5378_v23 = vand.u32 4294901760, %v2971_v14 }
   0x7   :  { %v2960_v11 = vand.u32 4294901760, %v61_v8  ;;  %v57_v12 = vld [vmem:[%s5358_s1 + $0x120] sm:$0xff]  ;;  %v2985_v19 = vsub.f32 %v69_v6, %v2956_v9  ;;  %v5377_v24 = vand.u32 4294901760, %v2974_v15  ;;  %294 = vmatpush.msra.mxu3 %v2943_v4  ;;  %v3102_v6 = vand.u32 4294901760, %v82_v56 }
   0x8   :  { %v53_v13 = vld [vmem:[%s5358_s1 + $0x100] sm:$0xff]  ;;  %v2979_v17 = vand.u32 4294901760, %v57_v12  ;;  %v2988_v20 = vsub.f32 %v65_v7, %v2958_v10  ;;  %v5376_v25 = vand.u32 4294901760, %v2977_v16  ;;  %100 = vmatpush.msra.mxu0 %v2945_v5  ;;  %242 = vmatpush.msra.mxu2 %v2974_v15  ;;  %v139_v30 = vsub.f32 %v2971_v14, %v5378_v23  ;;  %v74_v7 = vld [vmem:[%s5358_s1 + $0x1a8] sm:$0xff] }
   0x9   :  { %v49_v18 = vld [vmem:[%s5358_s1 + $0xe0] sm:$0xff]  ;;  %v2991_v21 = vsub.f32 %v61_v8, %v2960_v11  ;;  %v2993_v22 = vand.u32 4294901760, %v53_v13  ;;  %v5374_v26 = vand.u32 4294901760, %v2985_v19  ;;  %v145_v31 = vsub.f32 %v2974_v15, %v5377_v24  ;;  %296 = vmatpush.msra.mxu3 %v2945_v5 }
   0xa   :  { %v3003_v27 = vsub.f32 %v57_v12, %v2979_v17  ;;  %v3005_v28 = vand.u32 4294901760, %v49_v18  ;;  %v45_v29 = vld [vmem:[%s5358_s1 + $0xc0] sm:$0xff]  ;;  %v151_v32 = vsub.f32 %v2977_v16, %v5376_v25  ;;  %v5373_v33 = vand.u32 4294901760, %v2988_v20  ;;  %102 = vmatpush.msra.mxu0 %v2956_v9  ;;  %245 = vmatpush.msra.mxu2 %v2977_v16  ;;  %v46_v25 = vld [vmem:[%s5358_s1 + $0xc8] sm:$0xff] }
   0xb   :  { %v3024_v34 = vsub.f32 %v53_v13, %v2993_v22  ;;  %v5372_v35 = vand.u32 4294901760, %v2991_v21  ;;  %v41_v36 = vld [vmem:[%s5358_s1 + $0xa0] sm:$0xff]  ;;  %v140_v37 = vand.u32 4294901760, %v139_v30  ;;  %v146_v38 = vand.u32 4294901760, %v145_v31  ;;  %298 = vmatpush.msra.mxu3 %v2956_v9 }
   0xc   :  { %v157_v39 = vsub.f32 %v2985_v19, %v5374_v26  ;;  %v3035_v40 = vand.u32 4294901760, %v45_v29  ;;  %v3039_v41 = vsub.f32 %v49_v18, %v3005_v28  ;;  %v5369_v42 = vand.u32 4294901760, %v3003_v27  ;;  %v37_v43 = vld [vmem:[%s5358_s1 + $0x80] sm:$0xff]  ;;  %104 = vmatpush.msra.mxu0 %v2958_v10  ;;  %248 = vmatpush.msra.mxu2 %v2985_v19  ;;  %v50_v26 = vld [vmem:[%s5358_s1 + $0xe8] sm:$0xff] }
   0xd   :  { %141 = vmatpush.msra.mxu1 %v140_v37  ;;  %v152_v44 = vand.u32 4294901760, %v151_v32  ;;  %v163_v45 = vsub.f32 %v2988_v20, %v5373_v33  ;;  %v3049_v46 = vand.u32 4294901760, %v41_v36  ;;  %300 = vmatpush.msra.mxu3 %v2958_v10  ;;  %v169_v47 = vsub.f32 %v2991_v21, %v5372_v35  ;;  %v33_v49 = vld [vmem:[%s5358_s1 + $0x60] sm:$0xff] }
   0xe   :  { %v5368_v48 = vand.u32 4294901760, %v3024_v34  ;;  %106 = vmatpush.msra.mxu0 %v2960_v11  ;;  %v158_v50 = vand.u32 4294901760, %v157_v39  ;;  %v3062_v51 = vsub.f32 %v45_v29, %v3035_v40  ;;  %v3064_v52 = vand.u32 4294901760, %v37_v43  ;;  %251 = vmatpush.msra.mxu2 %v2988_v20  ;;  %v29_v55 = vld [vmem:[%s5358_s1 + $0x40] sm:$0xff] }
   0xf   :  { %147 = vmatpush.msra.mxu1 %v146_v38  ;;  %302 = vmatpush.msra.mxu3 %v2960_v11  ;;  %v175_v53 = vsub.f32 %v3003_v27, %v5369_v42  ;;  %v5366_v54 = vand.u32 4294901760, %v3039_v41  ;;  %v164_v57 = vand.u32 4294901760, %v163_v45  ;;  %v3080_v58 = vsub.f32 %v41_v36, %v3049_v46  ;;  %v25_v63 = vld [vmem:[%s5358_s1 + $0x20] sm:$0xff]  ;;  %v70_v36 = vld [vmem:[%s5358_s1 + $0x188] sm:$0xff] }
  0x10   :  { %108 = vmatpush.msra.mxu0 %v2979_v17  ;;  %v3082_v59 = vand.u32 4294901760, %v33_v49  ;;  %254 = vmatpush.msra.mxu2 %v2991_v21  ;;  %v170_v61 = vand.u32 4294901760, %v169_v47  ;;  %v181_v62 = vsub.f32 %v3024_v34, %v5368_v48  ;;  %v3097_v0 = vsub.f32 %v37_v43, %v3064_v52  ;;  %v21_v13 = vld [vmem:[%s5358_s1] sm:$0xff]  ;;  %v66_v47 = vld [vmem:[%s5358_s1 + $0x168] sm:$0xff] }
  0x11   :  { %153 = vmatpush.msra.mxu1 %v152_v44  ;;  %304 = vmatpush.msra.mxu3 %v2979_v17  ;;  %v3099_v1 = vand.u32 4294901760, %v29_v55  ;;  %v5365_v2 = vand.u32 4294901760, %v3062_v51  ;;  %v176_v8 = vand.u32 4294901760, %v175_v53  ;;  %v187_v12 = vsub.f32 %v3039_v41, %v5366_v54 }
  0x12   :  { %110 = vmatpush.msra.mxu0 %v2993_v22  ;;  %257 = vmatpush.msra.mxu2 %v3003_v27  ;;  %v3115_v18 = vand.u32 4294901760, %v78_v60  ;;  %v3119_v29 = vsub.f32 %v33_v49, %v3082_v59  ;;  %v3121_v30 = vand.u32 4294901760, %v25_v63  ;;  %v5364_v31 = vand.u32 4294901760, %v3080_v58 }
  0x13   :  { %159 = vmatpush.msra.mxu1 %v158_v50  ;;  %5483 = vst [vmem:[#allocation2_spill] sm:$0xff] %v3099_v1  ;;  %306 = vmatpush.msra.mxu3 %v2993_v22  ;;  %v3125_v32 = vsub.f32 %v82_v56, %v3102_v6  ;;  %v182_v37 = vand.u32 4294901760, %v181_v62  ;;  %v3132_v38 = vand.u32 4294901760, %v74_v7  ;;  %v193_v39 = vsub.f32 %v3062_v51, %v5365_v2 }
  0x14   :  { %112 = vmatpush.msra.mxu0 %v3005_v28  ;;  %5484 = vst [vmem:[#allocation3_spill] sm:$0xff] %v3121_v30  ;;  %260 = vmatpush.msra.mxu2 %v3024_v34  ;;  %v3139_v43 = vsub.f32 %v29_v55, %v3099_v1  ;;  %v3141_v44 = vand.u32 4294901760, %v21_v13  ;;  %v5367_v45 = vand.u32 4294901760, %v3097_v0  ;;  %v188_v49 = vand.u32 4294901760, %v187_v12 }
  0x15   :  { %165 = vmatpush.msra.mxu1 %v164_v57  ;;  %308 = vmatpush.msra.mxu3 %v3005_v28  ;;  %v3150_v50 = vsub.f32 %v78_v60, %v3115_v18  ;;  %v3152_v53 = vand.u32 4294901760, %v70_v36  ;;  %v199_v55 = vsub.f32 %v3080_v58, %v5364_v31  ;;  %v3159_v56 = vsub.f32 %v25_v63, %v3121_v30  ;;  %v62_v60 = vld [vmem:[%s5358_s1 + $0x148] sm:$0xff] }
  0x16   :  { %114 = vmatpush.msra.mxu0 %v3035_v40  ;;  %5485 = vst [vmem:[#allocation4_spill] sm:$0xff] %v3141_v44  ;;  %263 = vmatpush.msra.mxu2 %v3039_v41  ;;  %v5370_v57 = vand.u32 4294901760, %v3125_v32  ;;  %v3169_v62 = vsub.f32 %v74_v7, %v3132_v38  ;;  %v194_v63 = vand.u32 4294901760, %v193_v39  ;;  %v205_v12 = vsub.f32 %v3097_v0, %v5367_v45  ;;  %v58_v7 = vld [vmem:[%s5358_s1 + $0x128] sm:$0xff] }
  0x17   :  { %171 = vmatpush.msra.mxu1 %v170_v61  ;;  %310 = vmatpush.msra.mxu3 %v3035_v40  ;;  %5486 = vst [vmem:[#allocation5_spill] sm:$0xff] %v3150_v50  ;;  %v5371_v61 = vand.u32 4294901760, %v3119_v29  ;;  %v3178_v31 = vsub.f32 %v21_v13, %v3141_v44  ;;  %v5375_v2 = vand.u32 4294901760, %v3139_v43  ;;  %v3188_v39 = vsub.f32 %v70_v36, %v3152_v53  ;;  %v54_v36 = vld [vmem:[%s5358_s1 + $0x108] sm:$0xff] }
  0x18   :  { %116 = vmatpush.msra.mxu0 %v3049_v46  ;;  %266 = vmatpush.msra.mxu2 %v3062_v51  ;;  %5487 = vst [vmem:[#allocation6_spill] sm:$0xff] %v3169_v62  ;;  %v3190_v54 = vand.u32 4294901760, %v62_v60  ;;  %v200_v13 = vand.u32 4294901760, %v199_v55  ;;  %v480_v45 = vsub.f32 %v3125_v32, %v5370_v57  ;;  %v5380_v42 = vand.u32 4294901760, %v3159_v56 }
  0x19   :  { %177 = vmatpush.msra.mxu1 %v176_v8  ;;  %312 = vmatpush.msra.mxu3 %v3049_v46  ;;  %v3171_v8 = vand.u32 4294901760, %v66_v47  ;;  %v211_v48 = vsub.f32 %v3119_v29, %v5371_v61  ;;  %v3209_v57 = vand.u32 4294901760, %v58_v7  ;;  %v206_v61 = vand.u32 4294901760, %v205_v12 }
  0x1a   :  { %118 = vmatpush.msra.mxu0 %v3064_v52  ;;  %269 = vmatpush.msra.mxu2 %v3080_v58  ;;  %v217_v35 = vsub.f32 %v3139_v43, %v5375_v2  ;;  %v3226_v12 = vsub.f32 %v62_v60, %v3190_v54  ;;  %v3228_v2 = vand.u32 4294901760, %v54_v36  ;;  %v481_v24 = vand.u32 4294901760, %v480_v45 }
  0x1b   :  { %183 = vmatpush.msra.mxu1 %v182_v37  ;;  %314 = vmatpush.msra.mxu3 %v3064_v52  ;;  %v5379_v37 = vand.u32 4294901760, %v3150_v50  ;;  %v3207_v55 = vsub.f32 %v66_v47, %v3171_v8  ;;  %v212_v23 = vand.u32 4294901760, %v211_v48  ;;  %v3244_v33 = vsub.f32 %v58_v7, %v3209_v57  ;;  %v42_v48 = vld [vmem:[%s5358_s1 + $0xa8] sm:$0xff] }
  0x1c   :  { %120 = vmatpush.msra.mxu0 %v3082_v59  ;;  %272 = vmatpush.msra.mxu2 %v3097_v0  ;;  %v218_v45 = vand.u32 4294901760, %v217_v35  ;;  %v5490_v35 = vand.u32 4294901760, %v2971_v14 }
  0x1d   :  { %189 = vmatpush.msra.mxu1 %v188_v49  ;;  %316 = vmatpush.msra.mxu3 %v3082_v59  ;;  %v5382_v49 = vand.u32 4294901760, %v3169_v62  ;;  %v486_v47 = vsub.f32 %v3150_v50, %v5379_v37  ;;  %v223_v37 = vsub.f32 %v3159_v56, %v5380_v42  ;;  %v5488_v42 = vand.u32 4294901760, %v3178_v31 }
  0x1e   :  { %122 = vmatpush.msra.mxu0 %v3099_v1  ;;  %275 = vmatpush.msra.mxu2 %v3119_v29  ;;  %v3268_v50 = vand.u32 4294901760, %v42_v48 }
  0x1f   :  { %195 = vmatpush.msra.mxu1 %v194_v63  ;;  %318 = vmatpush.msra.mxu3 %v3099_v1  ;;  %v492_v60 = vsub.f32 %v3169_v62, %v5382_v49  ;;  %v3255_v49 = vand.u32 4294901760, %v46_v25  ;;  %v487_v7 = vand.u32 4294901760, %v486_v47  ;;  %v5489_v63 = vand.u32 4294901760, %v3188_v39  ;;  %v38_v47 = vld [vmem:[%s5358_s1 + $0x88] sm:$0xff] }
  0x20   :  { %124 = vmatpush.msra.mxu0 %v3121_v30  ;;  %278 = vmatpush.msra.mxu2 %v3139_v43  ;;  %v5491_v1 = vand.u32 4294901760, %v3207_v55 }
  0x21   :  { %201 = vmatpush.msra.mxu1 %v200_v13  ;;  %320 = vmatpush.msra.mxu3 %v3121_v30  ;;  %v3246_v13 = vand.u32 4294901760, %v50_v26  ;;  %v229_v30 = vsub.f32 %v3178_v31, %v5488_v42  ;;  %v498_v62 = vsub.f32 %v3188_v39, %v5489_v63  ;;  %v224_v42 = vand.u32 4294901760, %v223_v37 }
  0x22   :  { %126 = vmatpush.msra.mxu0 %v3141_v44  ;;  %281 = vmatpush.msra.mxu2 %v3159_v56  ;;  %v493_v63 = vand.u32 4294901760, %v492_v60  ;;  %v34_v60 = vld [vmem:[%s5358_s1 + $0x68] sm:$0xff] }
  0x23   :  { %207 = vmatpush.msra.mxu1 %v206_v61  ;;  %322 = vmatpush.msra.mxu3 %v3141_v44  ;;  %v3264_v61 = vsub.f32 %v54_v36, %v3228_v2  ;;  %v504_v36 = vsub.f32 %v3207_v55, %v5491_v1  ;;  %v5389_v44 = vand.u32 4294901760, %v3244_v33  ;;  %v3279_v14 = vsub.f32 %v50_v26, %v3246_v13 }
  0x24   :  { %333 = vmatpush.msrb.mxu0 %v5490_v35  ;;  %284 = vmatpush.msra.mxu2 %v3178_v31  ;;  %v230_v37 = vand.u32 4294901760, %v229_v30  ;;  %v499_v1 = vand.u32 4294901760, %v498_v62  ;;  %v5493_v35 = vand.u32 4294901760, %v3226_v12  ;;  %v5494_v30 = vand.u32 4294901760, %v2977_v16  ;;  %v30_v62 = vld [vmem:[%s5358_s1 + $0x48] sm:$0xff] }
  0x25   :  { %482 = vmatpush.msrb.mxu3 %v481_v24  ;;  %213 = vmatpush.msra.mxu1 %v212_v23  ;;  %v5492_v24 = vand.u32 4294901760, %v2974_v15  ;;  %v3285_v23 = vsub.f32 %v46_v25, %v3255_v49  ;;  %v5391_v15 = vand.u32 4294901760, %v3264_v61  ;;  %v3300_v25 = vsub.f32 %v42_v48, %v3268_v50 }
  0x26   :  { %437 = vmatpush.msrb.mxu2 %v3102_v6  ;;  %v510_v26 = vsub.f32 %v3226_v12, %v5493_v35  ;;  %v5390_v35 = vand.u32 4294901760, %v3279_v14  ;;  %v3309_v16 = vand.u32 4294901760, %v34_v60 }
  0x27   :  { %337 = vmatpush.msrb.mxu0 %v5492_v24  ;;  %488 = vmatpush.msrb.mxu3 %v487_v7  ;;  %v3294_v24 = vand.u32 4294901760, %v38_v47  ;;  %v516_v7 = vsub.f32 %v3244_v33, %v5389_v44 }
  0x28   :  { %219 = vmatpush.msra.mxu1 %v218_v45  ;;  %439 = vmatpush.msrb.mxu2 %v3115_v18  ;;  %v505_v45 = vand.u32 4294901760, %v504_v36  ;;  %v522_v36 = vsub.f32 %v3264_v61, %v5391_v15 }
  0x29   :  { %341 = vmatpush.msrb.mxu0 %v5494_v30  ;;  %494 = vmatpush.msrb.mxu3 %v493_v63  ;;  %v5495_v30 = vand.u32 4294901760, %v2985_v19  ;;  %v511_v63 = vand.u32 4294901760, %v510_v26  ;;  %v3322_v44 = vsub.f32 %v38_v47, %v3294_v24  ;;  %v3324_v19 = vand.u32 4294901760, %v30_v62 }
  0x2a   :  { %225 = vmatpush.msra.mxu1 %v224_v42  ;;  %441 = vmatpush.msrb.mxu2 %v3132_v38  ;;  %v26_v42 = vld [vmem:[%s5358_s1 + $0x28] sm:$0xff]  ;;  %v528_v47 = vsub.f32 %v3279_v14, %v5390_v35  ;;  %v3338_v26 = vsub.f32 %v34_v60, %v3309_v16  ;;  %v523_v60 = vand.u32 4294901760, %v522_v36 }
  0x2b   :  { %345 = vmatpush.msrb.mxu0 %v5495_v30  ;;  %500 = vmatpush.msrb.mxu3 %v499_v1  ;;  %v5496_v30 = vand.u32 4294901760, %v2988_v20  ;;  %v517_v1 = vand.u32 4294901760, %v516_v7  ;;  %v3340_v20 = vand.u32 4294901760, %v26_v42  ;;  %v545_v35 = vand.u32 4294901760, %v3322_v44 }
  0x2c   :  { %231 = vmatpush.msra.mxu1 %v230_v37  ;;  %v22_v37 = vld [vmem:[%s5358_s1 + $0x8] sm:$0xff]  ;;  %443 = vmatpush.msrb.mxu2 %v3152_v53  ;;  %v3354_v15 = vsub.f32 %v30_v62, %v3324_v19  ;;  %v551_v62 = vand.u32 4294901760, %v3338_v26 }
  0x2d   :  { %349 = vmatpush.msrb.mxu0 %v5496_v30  ;;  %506 = vmatpush.msrb.mxu3 %v505_v45  ;;  %v5497_v30 = vand.u32 4294901760, %v2991_v21  ;;  %v5498_v45 = vand.u32 4294901760, %v3285_v23  ;;  %v3356_v48 = vand.u32 4294901760, %v22_v37  ;;  %v5499_v21 = vand.u32 4294901760, %v3003_v27 }
  0x2e   :  { %400 = vmatpush.msrb.mxu1 %v2941_v3  ;;  %v20_v3 = vld [vmem:[%s5359_s0] sm:$0xf]  ;;  %445 = vmatpush.msrb.mxu2 %v3171_v8  ;;  %v5502_v27 = vand.u32 4294901760, %v3024_v34 }
  0x2f   :  { %353 = vmatpush.msrb.mxu0 %v5497_v30  ;;  %v534_v7 = vsub.f32 %v3285_v23, %v5498_v45  ;;  %512 = vmatpush.msrb.mxu3 %v511_v63  ;;  %v529_v30 = vand.u32 4294901760, %v528_v47  ;;  %v5501_v63 = vand.u32 4294901760, %v3300_v25  ;;  %v3369_v45 = vsub.f32 %v26_v42, %v3340_v20 }
  0x30   :  { %402 = vmatpush.msrb.mxu1 %v2943_v4  ;;  %v3361_v4 = vand.u32 4294901760, %v20_v3  ;;  %447 = vmatpush.msrb.mxu2 %v3190_v54  ;;  %v557_v47 = vand.u32 4294901760, %v3354_v15  ;;  %v5503_v42 = vand.u32 4294901760, %v3039_v41 }
  0x31   :  { %357 = vmatpush.msrb.mxu0 %v5499_v21  ;;  %518 = vmatpush.msrb.mxu3 %v517_v1  ;;  %v540_v36 = vsub.f32 %v3300_v25, %v5501_v63  ;;  %v546_v1 = vsub.f32 %v3322_v44, %v545_v35  ;;  %v3380_v21 = vsub.f32 %v22_v37, %v3356_v48  ;;  %v5504_v37 = vand.u32 4294901760, %v3062_v51 }
  0x32   :  { %404 = vmatpush.msrb.mxu1 %v2945_v5  ;;  %5500 = vst [vmem:[#allocation7_spill] sm:$0xff] %v3361_v4  ;;  %449 = vmatpush.msrb.mxu2 %v3209_v57  ;;  %v535_v5 = vand.u32 4294901760, %v534_v7  ;;  %v552_v7 = vsub.f32 %v3338_v26, %v551_v62  ;;  %v558_v41 = vsub.f32 %v3354_v15, %v557_v47 }
  0x33   :  { %361 = vmatpush.msrb.mxu0 %v5502_v27  ;;  %524 = vmatpush.msrb.mxu3 %v523_v60  ;;  %v541_v34 = vand.u32 4294901760, %v540_v36  ;;  %v563_v60 = vand.u32 4294901760, %v3369_v45  ;;  %v5506_v36 = vand.u32 4294901760, %v3097_v0  ;;  %v5507_v27 = vand.u32 4294901760, %v3119_v29 }
  0x34   :  { %406 = vmatpush.msrb.mxu1 %v2956_v9  ;;  %v3386_v9 = vsub.f32 %v20_v3, %v3361_v4  ;;  %451 = vmatpush.msrb.mxu2 %v3228_v2  ;;  %v569_v3 = vand.u32 4294901760, %v3380_v21  ;;  %v5508_v0 = vand.u32 4294901760, %v3139_v43  ;;  %v5509_v29 = vand.u32 4294901760, %v3159_v56  ;;  %v5518_v56 = vld [vmem:[#allocation4_spill] sm:$0xff] }
  0x35   :  { %365 = vmatpush.msrb.mxu0 %v5503_v42  ;;  %530 = vmatpush.msrb.mxu3 %v529_v30  ;;  %v5505_v30 = vand.u32 4294901760, %v3080_v58  ;;  %v564_v63 = vsub.f32 %v3369_v45, %v563_v60  ;;  %v5510_v42 = vand.u32 4294901760, %v3178_v31  ;;  %v5514_v31 = vld [vmem:[#allocation6_spill] sm:$0xff] }
  0x36   :  { %408 = vmatpush.msrb.mxu1 %v2958_v10  ;;  %453 = vmatpush.msrb.mxu2 %v3246_v13  ;;  %v547_v10 = vand.u32 4294901760, %v546_v1  ;;  %v3405_v51 = vand.u32 4294901760, %v3386_v9  ;;  %v570_v58 = vsub.f32 %v3380_v21, %v569_v3 }
  0x37   :  { %369 = vmatpush.msrb.mxu0 %v5504_v37  ;;  %536 = vmatpush.msrb.mxu3 %v535_v5 }
  0x38   :  { %410 = vmatpush.msrb.mxu1 %v2960_v11  ;;  %455 = vmatpush.msrb.mxu2 %v3255_v49  ;;  %v553_v11 = vand.u32 4294901760, %v552_v7  ;;  %v130_v5 = vsub.f32 %v3386_v9, %v3405_v51  ;;  %v571_v1 = vand.u32 4294901760, %v570_v58  ;;  %v5520_v7 = vand.u32 4294901760, %v3207_v55 }
  0x39   :  { %373 = vmatpush.msrb.mxu0 %v5505_v30  ;;  %542 = vmatpush.msrb.mxu3 %v541_v34  ;;  %v5519_v34 = vand.u32 4294901760, %v3188_v39 }
  0x3a   :  { %412 = vmatpush.msrb.mxu1 %v2979_v17  ;;  %457 = vmatpush.msrb.mxu2 %v3268_v50  ;;  %v559_v17 = vand.u32 4294901760, %v558_v41 }
  0x3b   :  { %377 = vmatpush.msrb.mxu0 %v5506_v36  ;;  %548 = vmatpush.msrb.mxu3 %v547_v10 }
  0x3c   :  { %414 = vmatpush.msrb.mxu1 %v2993_v22  ;;  %459 = vmatpush.msrb.mxu2 %v3294_v24  ;;  %v565_v22 = vand.u32 4294901760, %v564_v63  ;;  %v47_v63 = vld [vmem:[%s5358_s1 + $0xd0] sm:$0xff] }
  0x3d   :  { %381 = vmatpush.msrb.mxu0 %v5507_v27  ;;  %554 = vmatpush.msrb.mxu3 %v553_v11  ;;  %v43_v27 = vld [vmem:[%s5358_s1 + $0xb0] sm:$0xff] }
  0x3e   :  { %416 = vmatpush.msrb.mxu1 %v3005_v28  ;;  %461 = vmatpush.msrb.mxu2 %v3309_v16  ;;  %v3431_v28 = vand.u32 4294901760, %v130_v5 }
  0x3f   :  { %385 = vmatpush.msrb.mxu0 %v5508_v0  ;;  %560 = vmatpush.msrb.mxu3 %v559_v17  ;;  %v3636_v0 = vand.u32 4294901760, %v47_v63 }
  0x40   :  { %418 = vmatpush.msrb.mxu1 %v3035_v40  ;;  %463 = vmatpush.msrb.mxu2 %v3324_v19  ;;  %v5511_v40 = vld [vmem:[#allocation5_spill] sm:$0xff] }
  0x41   :  { %389 = vmatpush.msrb.mxu0 %v5509_v29  ;;  %566 = vmatpush.msrb.mxu3 %v565_v22  ;;  %v5515_v43 = vand.u32 4294901760, %v5511_v40  ;;  %v39_v29 = vld [vmem:[%s5358_s1 + $0x90] sm:$0xff] }
  0x42   :  { %420 = vmatpush.msrb.mxu1 %v3049_v46  ;;  %465 = vmatpush.msrb.mxu2 %v3340_v20  ;;  %v5512_v46 = vand.u32 4294901760, %v3125_v32 }
  0x43   :  { %393 = vmatpush.msrb.mxu0 %v5510_v42  ;;  %572 = vmatpush.msrb.mxu3 %v571_v1 }
  0x44   :  { %422 = vmatpush.msrb.mxu1 %v3064_v52  ;;  %132 = vmatmul.f32.vlgmr.msra.gmra.mxu0 %v3431_v28  ;;  %v5513_v52 = vld [vmem:[#allocation2_spill] sm:$0xff] }
  0x45   :  { %287 = vmatmul.f32.vlgmr.msra.gmra.mxu2 %v3386_v9  ;;  %326 = vmatmul.f32.vlgmr.msra.gmra.mxu3 %v3405_v51 }
  0x46   :  { %580 = vmatpush.msra.mxu0 %v3125_v32  ;;  %741 = vmatpush.msra.mxu3 %v3102_v6  ;;  %v5517_v32 = vand.u32 4294901760, %v5514_v31 }
  0x47   :  { %424 = vmatpush.msrb.mxu1 %v3082_v59  ;;  %467 = vmatpush.msrb.mxu2 %v3356_v48  ;;  %v5516_v59 = vld [vmem:[#allocation3_spill] sm:$0xff] }
  0x48   :  { %583 = vmatpush.msra.mxu0 %v5511_v40  ;;  %743 = vmatpush.msra.mxu3 %v3115_v18 }
  0x49   :  { %674 = vmatpush.msra.mxu2 %v5512_v46  ;;  %426 = vmatpush.msrb.mxu1 %v5513_v52  ;;  %v3652_v52 = vand.u32 4294901760, %v43_v27 }
  0x4a   :  { %586 = vmatpush.msra.mxu0 %v5514_v31  ;;  %233 = vmatmul.f32.vlgmr.msra.gmra.mxu1 %v3361_v4 }
  0x4b   :  { %678 = vmatpush.msra.mxu2 %v5515_v43  ;;  %745 = vmatpush.msra.mxu3 %v3132_v38  ;;  %v84_v43 = vld [vmem:[%s5358_s1 + $0x1f8] sm:$0xff] }
  0x4c   :  { %428 = vmatpush.msrb.mxu1 %v5516_v59  ;;  %589 = vmatpush.msra.mxu0 %v3188_v39  ;;  %v79_v39 = vld [vmem:[%s5358_s1 + $0x1d0] sm:$0xff] }
  0x4d   :  { %682 = vmatpush.msra.mxu2 %v5517_v32  ;;  %747 = vmatpush.msra.mxu3 %v3152_v53 }
  0x4e   :  { %430 = vmatpush.msrb.mxu1 %v5518_v56  ;;  %592 = vmatpush.msra.mxu0 %v3207_v55  ;;  %v5526_v55 = vand.u32 4294901760, %v3300_v25  ;;  %v3665_v56 = vsub.f32 %v47_v63, %v3636_v0 }
  0x4f   :  { %686 = vmatpush.msra.mxu2 %v5519_v34  ;;  %749 = vmatpush.msra.mxu3 %v3171_v8  ;;  %v3667_v34 = vand.u32 4294901760, %v39_v29 }
  0x50   :  { %633 = vmatpush.msra.mxu1 %v3102_v6  ;;  %395 = vmatmul.f32.vlgmr.msrb.gmra.mxu0 %v3361_v4  ;;  %v5521_v6 = vand.u32 4294901760, %v3226_v12 }
  0x51   :  { %595 = vmatpush.msra.mxu0 %v3226_v12  ;;  %690 = vmatpush.msra.mxu2 %v5520_v7  ;;  %v35_v7 = vld [vmem:[%s5358_s1 + $0x70] sm:$0xff] }
  0x52   :  { %635 = vmatpush.msra.mxu1 %v3115_v18  ;;  %751 = vmatpush.msra.mxu3 %v3190_v54  ;;  %v5522_v18 = vand.u32 4294901760, %v3244_v33 }
  0x53   :  { %432 = vmatmul.f32.vlgmr.msrb.gmra.mxu1 %v3361_v4  ;;  %598 = vmatpush.msra.mxu0 %v3244_v33  ;;  %v83_v33 = vld [vmem:[%s5358_s1 + $0x1f0] sm:$0xff] }
  0x54   :  { %637 = vmatpush.msra.mxu1 %v3132_v38  ;;  %694 = vmatpush.msra.mxu2 %v5521_v6  ;;  %v5523_v38 = vand.u32 4294901760, %v3264_v61 }
  0x55   :  { %753 = vmatpush.msra.mxu3 %v3209_v57  ;;  %601 = vmatpush.msra.mxu0 %v3264_v61 }
  0x56   :  { %639 = vmatpush.msra.mxu1 %v3152_v53  ;;  %698 = vmatpush.msra.mxu2 %v5522_v18  ;;  %v5524_v53 = vand.u32 4294901760, %v3279_v14  ;;  %v80_v18 = vld [vmem:[%s5358_s1 + $0x1d8] sm:$0xff] }
  0x57   :  { %755 = vmatpush.msra.mxu3 %v3228_v2  ;;  %604 = vmatpush.msra.mxu0 %v3279_v14 }
  0x58   :  { %641 = vmatpush.msra.mxu1 %v3171_v8  ;;  %702 = vmatpush.msra.mxu2 %v5523_v38  ;;  %v5525_v8 = vand.u32 4294901760, %v3285_v23 }
  0x59   :  { %757 = vmatpush.msra.mxu3 %v3246_v13  ;;  %607 = vmatpush.msra.mxu0 %v3285_v23  ;;  %v63_v23 = vld [vmem:[%s5358_s1 + $0x150] sm:$0xff] }
  0x5a   :  { %643 = vmatpush.msra.mxu1 %v3190_v54  ;;  %706 = vmatpush.msra.mxu2 %v5524_v53  ;;  %v3503_v54 = vand.u32 4294901760, %v83_v33  ;;  %v3682_v53 = vsub.f32 %v43_v27, %v3652_v52 }
  0x5b   :  { %759 = vmatpush.msra.mxu3 %v3255_v49  ;;  %610 = vmatpush.msra.mxu0 %v3300_v25 }
  0x5c   :  { %645 = vmatpush.msra.mxu1 %v3209_v57  ;;  %710 = vmatpush.msra.mxu2 %v5525_v8  ;;  %v75_v57 = vld [vmem:[%s5358_s1 + $0x1b0] sm:$0xff]  ;;  %v3524_v12 = vsub.f32 %v83_v33, %v3503_v54 }
  0x5d   :  { %761 = vmatpush.msra.mxu3 %v3268_v50  ;;  %613 = vmatpush.msra.mxu0 %v3322_v44  ;;  %v3532_v44 = vand.u32 4294901760, %v75_v57  ;;  %v31_v8 = vld [vmem:[%s5358_s1 + $0x50] sm:$0xff] }
  0x5e   :  { %647 = vmatpush.msra.mxu1 %v3228_v2  ;;  %714 = vmatpush.msra.mxu2 %v5526_v55  ;;  %v3519_v2 = vand.u32 4294901760, %v79_v39 }
  0x5f   :  { %763 = vmatpush.msra.mxu3 %v3294_v24  ;;  %616 = vmatpush.msra.mxu0 %v3338_v26  ;;  %v3571_v26 = vand.u32 4294901760, %v63_v23 }
  0x60   :  { %649 = vmatpush.msra.mxu1 %v3246_v13  ;;  %718 = vmatpush.msra.mxu2 %v545_v35  ;;  %v71_v13 = vld [vmem:[%s5358_s1 + $0x190] sm:$0xff]  ;;  %v3543_v61 = vsub.f32 %v79_v39, %v3519_v2  ;;  %v3688_v39 = vand.u32 4294901760, %v84_v43 }
  0x61   :  { %765 = vmatpush.msra.mxu3 %v3309_v16  ;;  %619 = vmatpush.msra.mxu0 %v3354_v15  ;;  %v3545_v14 = vand.u32 4294901760, %v71_v13  ;;  %v3557_v15 = vsub.f32 %v75_v57, %v3532_v44  ;;  %v3695_v57 = vand.u32 4294901760, %v35_v7 }
  0x62   :  { %651 = vmatpush.msra.mxu1 %v3255_v49  ;;  %722 = vmatpush.msra.mxu2 %v551_v62  ;;  %v67_v49 = vld [vmem:[%s5358_s1 + $0x170] sm:$0xff]  ;;  %v5402_v62 = vand.u32 4294901760, %v3543_v61  ;;  %v3723_v27 = vsub.f32 %v84_v43, %v3688_v39 }
  0x63   :  { %767 = vmatpush.msra.mxu3 %v3324_v19  ;;  %622 = vmatpush.msra.mxu0 %v3369_v45  ;;  %v3559_v25 = vand.u32 4294901760, %v67_v49  ;;  %v3569_v35 = vsub.f32 %v71_v13, %v3545_v14  ;;  %v55_v45 = vld [vmem:[%s5358_s1 + $0x110] sm:$0xff]  ;;  %v5401_v10 = vand.u32 4294901760, %v3557_v15  ;;  %5527 = vst [vmem:[#allocation5_spill] sm:$0xff] %v3695_v57  ;;  %v76_v13 = vld [vmem:[%s5358_s1 + $0x1b8] sm:$0xff] }
  0x64   :  { %653 = vmatpush.msra.mxu1 %v3268_v50  ;;  %726 = vmatpush.msra.mxu2 %v557_v47  ;;  %v5403_v50 = vand.u32 4294901760, %v3524_v12  ;;  %v827_v41 = vsub.f32 %v3543_v61, %v5402_v62  ;;  %5529 = vst [vmem:[#allocation6_spill] sm:$0xff] %v3723_v27 }
  0x65   :  { %769 = vmatpush.msra.mxu3 %v3340_v20  ;;  %625 = vmatpush.msra.mxu0 %v3380_v21  ;;  %v3588_v37 = vsub.f32 %v67_v49, %v3559_v25  ;;  %v51_v21 = vld [vmem:[%s5358_s1 + $0xf0] sm:$0xff]  ;;  %v5399_v30 = vand.u32 4294901760, %v3569_v35  ;;  %v833_v36 = vsub.f32 %v3557_v15, %v5401_v10 }
  0x66   :  { %655 = vmatpush.msra.mxu1 %v3294_v24  ;;  %730 = vmatpush.msra.mxu2 %v563_v60  ;;  %v59_v24 = vld [vmem:[%s5358_s1 + $0x130] sm:$0xff]  ;;  %v821_v47 = vsub.f32 %v3524_v12, %v5403_v50  ;;  %v3620_v17 = vand.u32 4294901760, %v51_v21  ;;  %v828_v5 = vand.u32 4294901760, %v827_v41  ;;  %v3712_v41 = vand.u32 4294901760, %v31_v8 }
  0x67   :  { %771 = vmatpush.msra.mxu3 %v3356_v48  ;;  %473 = vmatmul.f32.vlgmr.msrb.gmra.mxu2 %v3431_v28  ;;  %v3583_v60 = vand.u32 4294901760, %v59_v24  ;;  %v839_v22 = vsub.f32 %v3569_v35, %v5399_v30  ;;  %v834_v42 = vand.u32 4294901760, %v833_v36  ;;  %v5395_v36 = vand.u32 4294901760, %v3682_v53 }
  0x68   :  { %574 = vmatmul.f32.vlgmr.msrb.gmra.mxu3 %v3361_v4  ;;  %778 = vmatpush.msrb.mxu0 %v3503_v54  ;;  %v3650_v46 = vsub.f32 %v51_v21, %v3620_v17  ;;  %5528 = vst [vmem:[#allocation2_spill] sm:$0xff] %v3712_v41 }
  0x69   :  { %974 = vmatpush.msrb.mxu3 %v3503_v54  ;;  %657 = vmatpush.msra.mxu1 %v3309_v16  ;;  %v3593_v16 = vand.u32 4294901760, %v55_v45  ;;  %v3610_v11 = vsub.f32 %v59_v24, %v3583_v60  ;;  %v840_v59 = vand.u32 4294901760, %v839_v22  ;;  %v5392_v24 = vand.u32 4294901760, %v3665_v56  ;;  %v72_v22 = vld [vmem:[%s5358_s1 + $0x198] sm:$0xff] }
  0x6a   :  { %734 = vmatpush.msra.mxu2 %v569_v3  ;;  %780 = vmatpush.msrb.mxu0 %v3519_v2  ;;  %v3604_v3 = vsub.f32 %v63_v23, %v3571_v26  ;;  %v5393_v33 = vand.u32 4294901760, %v3650_v46  ;;  %v3702_v23 = vsub.f32 %v39_v29, %v3667_v34 }
  0x6b   :  { %976 = vmatpush.msrb.mxu3 %v3519_v2  ;;  %659 = vmatpush.msra.mxu1 %v3324_v19  ;;  %v822_v19 = vand.u32 4294901760, %v821_v47  ;;  %v3626_v58 = vsub.f32 %v55_v45, %v3593_v16  ;;  %v5396_v1 = vand.u32 4294901760, %v3610_v11  ;;  %v27_v45 = vld [vmem:[%s5358_s1 + $0x30] sm:$0xff]  ;;  %v3708_v47 = vand.u32 4294901760, %v80_v18 }
  0x6c   :  { %921 = vmatpush.msrb.mxu2 %v3524_v12  ;;  %782 = vmatpush.msrb.mxu0 %v3532_v44  ;;  %v869_v63 = vsub.f32 %v3650_v46, %v5393_v33  ;;  %v875_v43 = vsub.f32 %v3665_v56, %v5392_v24  ;;  %v5404_v24 = vand.u32 4294901760, %v3723_v27 }
  0x6d   :  { %978 = vmatpush.msrb.mxu3 %v3532_v44  ;;  %661 = vmatpush.msra.mxu1 %v3340_v20  ;;  %v5398_v20 = vand.u32 4294901760, %v3588_v37  ;;  %v5394_v31 = vand.u32 4294901760, %v3626_v58  ;;  %v857_v6 = vsub.f32 %v3610_v11, %v5396_v1 }
  0x6e   :  { %924 = vmatpush.msrb.mxu2 %v3543_v61  ;;  %784 = vmatpush.msrb.mxu0 %v3545_v14 }
  0x6f   :  { %980 = vmatpush.msrb.mxu3 %v3545_v14  ;;  %663 = vmatpush.msra.mxu1 %v3356_v48  ;;  %v5397_v48 = vand.u32 4294901760, %v3604_v3  ;;  %v845_v40 = vsub.f32 %v3588_v37, %v5398_v20  ;;  %v863_v55 = vsub.f32 %v3626_v58, %v5394_v31  ;;  %v858_v21 = vand.u32 4294901760, %v857_v6 }
  0x70   :  { %927 = vmatpush.msrb.mxu2 %v3557_v15  ;;  %786 = vmatpush.msrb.mxu0 %v3559_v25  ;;  %v3745_v6 = vsub.f32 %v80_v18, %v3708_v47  ;;  %v881_v18 = vsub.f32 %v3682_v53, %v5395_v36  ;;  %v876_v36 = vand.u32 4294901760, %v875_v43  ;;  %v56_v43 = vld [vmem:[%s5358_s1 + $0x118] sm:$0xff] }
  0x71   :  { %736 = vmatmul.f32.vlgmr.msra.gmra.mxu2 %v3361_v4  ;;  %823 = vmatpush.msrb.mxu1 %v822_v19  ;;  %v851_v32 = vsub.f32 %v3604_v3, %v5397_v48  ;;  %v846_v38 = vand.u32 4294901760, %v845_v40  ;;  %v23_v19 = vld [vmem:[%s5358_s1 + $0x10] sm:$0xff]  ;;  %v864_v29 = vand.u32 4294901760, %v863_v55  ;;  %v3735_v40 = vand.u32 4294901760, %v27_v45 }
  0x72   :  { %930 = vmatpush.msrb.mxu2 %v3569_v35  ;;  %982 = vmatpush.msrb.mxu3 %v3559_v25  ;;  %5532 = vst [vmem:[#allocation8_spill] sm:$0xff] %v3745_v6  ;;  %v3755_v55 = vand.u32 4294901760, %v72_v22  ;;  %v3819_v20 = vand.u32 4294901760, %v56_v43 }
  0x73   :  { %628 = vmatmul.f32.vlgmr.msra.gmra.mxu0 %v3386_v9  ;;  %773 = vmatmul.f32.vlgmr.msra.gmra.mxu3 %v3361_v4  ;;  %v852_v49 = vand.u32 4294901760, %v851_v32  ;;  %5530 = vst [vmem:[#allocation3_spill] sm:$0xff] %v3735_v40  ;;  %v5400_v32 = vand.u32 4294901760, %v3702_v23 }
  0x74   :  { %788 = vmatpush.msrb.mxu0 %v3571_v26  ;;  %829 = vmatpush.msrb.mxu1 %v828_v5  ;;  %v3725_v5 = vand.u32 4294901760, %v76_v13  ;;  %v3791_v30 = vsub.f32 %v72_v22, %v3755_v55 }
  0x75   :  { %933 = vmatpush.msrb.mxu2 %v3588_v37  ;;  %984 = vmatpush.msrb.mxu3 %v3571_v26  ;;  %v887_v1 = vsub.f32 %v3702_v23, %v5400_v32  ;;  %v1162_v32 = vsub.f32 %v3723_v27, %v5404_v24 }
  0x76   :  { %667 = vmatmul.f32.vlgmr.msra.gmra.mxu1 %v3405_v51  ;;  %790 = vmatpush.msrb.mxu0 %v3583_v60  ;;  %v3763_v33 = vsub.f32 %v76_v13, %v3725_v5  ;;  %v60_v13 = vld [vmem:[%s5358_s1 + $0x138] sm:$0xff]  ;;  %5534 = vst [vmem:[#allocation10_spill] sm:$0xff] %v3791_v30 }
  0x77   :  { %835 = vmatpush.msrb.mxu1 %v834_v42  ;;  %936 = vmatpush.msrb.mxu2 %v3604_v3  ;;  %v3733_v42 = vsub.f32 %v35_v7, %v3695_v57  ;;  %v68_v7 = vld [vmem:[%s5358_s1 + $0x178] sm:$0xff]  ;;  %v3803_v62 = vand.u32 4294901760, %v60_v13  ;;  %v1163_v10 = vand.u32 4294901760, %v1162_v32 }
  0x78   :  { %986 = vmatpush.msrb.mxu3 %v3583_v60  ;;  %792 = vmatpush.msrb.mxu0 %v3593_v16  ;;  %5533 = vst [vmem:[#allocation9_spill] sm:$0xff] %v3763_v33  ;;  %v3774_v31 = vand.u32 4294901760, %v68_v7  ;;  %v5536_v50 = vand.u32 4294901760, %v3763_v33 }
  0x79   :  { %841 = vmatpush.msrb.mxu1 %v840_v59  ;;  %939 = vmatpush.msrb.mxu2 %v3610_v11  ;;  %v3741_v59 = vand.u32 4294901760, %v23_v19 }
  0x7a   :  { %988 = vmatpush.msrb.mxu3 %v3593_v16  ;;  %794 = vmatpush.msrb.mxu0 %v3620_v17  ;;  %v1174_v4 = vsub.f32 %v3763_v33, %v5536_v50 }
  0x7b   :  { %847 = vmatpush.msrb.mxu1 %v846_v38  ;;  %942 = vmatpush.msrb.mxu2 %v3626_v58  ;;  %5531 = vst [vmem:[#allocation4_spill] sm:$0xff] %v3741_v59  ;;  %v3753_v38 = vsub.f32 %v31_v8, %v3712_v41  ;;  %v64_v8 = vld [vmem:[%s5358_s1 + $0x158] sm:$0xff]  ;;  %v3784_v48 = vsub.f32 %v23_v19, %v3741_v59  ;;  %v882_v19 = vand.u32 4294901760, %v881_v18  ;;  %v888_v18 = vand.u32 4294901760, %v887_v1 }
  0x7c   :  { %990 = vmatpush.msrb.mxu3 %v3620_v17  ;;  %796 = vmatpush.msrb.mxu0 %v3636_v0 }
  0x7d   :  { %853 = vmatpush.msrb.mxu1 %v852_v49  ;;  %945 = vmatpush.msrb.mxu2 %v3650_v46  ;;  %v870_v49 = vand.u32 4294901760, %v869_v63  ;;  %v5405_v63 = vand.u32 4294901760, %v3733_v42 }
  0x7e   :  { %992 = vmatpush.msrb.mxu3 %v3636_v0  ;;  %798 = vmatpush.msrb.mxu0 %v3652_v52 }
  0x7f   :  { %859 = vmatpush.msrb.mxu1 %v858_v21  ;;  %948 = vmatpush.msrb.mxu2 %v3665_v56  ;;  %v3771_v21 = vsub.f32 %v27_v45, %v3735_v40  ;;  %v5406_v45 = vand.u32 4294901760, %v3745_v6  ;;  %v893_v22 = vsub.f32 %v3733_v42, %v5405_v63  ;;  %v52_v63 = vld [vmem:[%s5358_s1 + $0xf8] sm:$0xff] }
  0x80   :  { %994 = vmatpush.msrb.mxu3 %v3652_v52  ;;  %800 = vmatpush.msrb.mxu0 %v3667_v34 }
  0x81   :  { %865 = vmatpush.msrb.mxu1 %v864_v29  ;;  %951 = vmatpush.msrb.mxu2 %v3682_v53  ;;  %v3793_v29 = vand.u32 4294901760, %v64_v8  ;;  %v1168_v24 = vsub.f32 %v3745_v6, %v5406_v45  ;;  %v3838_v6 = vsub.f32 %v60_v13, %v3803_v62  ;;  %v5538_v13 = vand.u32 4294901760, %v3784_v48 }
  0x82   :  { %996 = vmatpush.msrb.mxu3 %v3667_v34  ;;  %802 = vmatpush.msrb.mxu0 %v3695_v57 }
  0x83   :  { %871 = vmatpush.msrb.mxu1 %v870_v49  ;;  %954 = vmatpush.msrb.mxu2 %v3702_v23  ;;  %v3812_v49 = vsub.f32 %v68_v7, %v3774_v31  ;;  %v5535_v7 = vand.u32 4294901760, %v3753_v38  ;;  %v3831_v45 = vsub.f32 %v64_v8, %v3793_v29  ;;  %v894_v8 = vand.u32 4294901760, %v893_v22  ;;  %v44_v22 = vld [vmem:[%s5358_s1 + $0xb8] sm:$0xff] }
  0x84   :  { %998 = vmatpush.msrb.mxu3 %v3695_v57  ;;  %804 = vmatpush.msrb.mxu0 %v3712_v41  ;;  %v1169_v50 = vand.u32 4294901760, %v1168_v24  ;;  %v911_v33 = vsub.f32 %v3784_v48, %v5538_v13  ;;  %v3856_v57 = vsub.f32 %v56_v43, %v3819_v20  ;;  %v5540_v43 = vand.u32 4294901760, %v3524_v12 }
  0x85   :  { %877 = vmatpush.msrb.mxu1 %v876_v36  ;;  %957 = vmatpush.msrb.mxu2 %v3733_v42  ;;  %v899_v1 = vsub.f32 %v3753_v38, %v5535_v7  ;;  %v48_v7 = vld [vmem:[%s5358_s1 + $0xd8] sm:$0xff]  ;;  %v5537_v36 = vand.u32 4294901760, %v3771_v21  ;;  %v1175_v13 = vand.u32 4294901760, %v1174_v4  ;;  %v3882_v12 = vand.u32 4294901760, %v44_v22 }
  0x86   :  { %1000 = vmatpush.msrb.mxu3 %v3712_v41  ;;  %806 = vmatpush.msrb.mxu0 %v3735_v40  ;;  %v3849_v41 = vand.u32 4294901760, %v52_v63  ;;  %v5542_v4 = vand.u32 4294901760, %v3543_v61 }
  0x87   :  { %883 = vmatpush.msrb.mxu1 %v882_v19  ;;  %960 = vmatpush.msrb.mxu2 %v3753_v38  ;;  %v905_v32 = vsub.f32 %v3771_v21, %v5537_v36  ;;  %v900_v36 = vand.u32 4294901760, %v899_v1  ;;  %v5539_v19 = vand.u32 4294901760, %v3791_v30 }
  0x88   :  { %1002 = vmatpush.msrb.mxu3 %v3735_v40  ;;  %808 = vmatpush.msrb.mxu0 %v3741_v59  ;;  %v3867_v40 = vand.u32 4294901760, %v48_v7 }
  0x89   :  { %889 = vmatpush.msrb.mxu1 %v888_v18  ;;  %963 = vmatpush.msrb.mxu2 %v3771_v21  ;;  %v1180_v24 = vsub.f32 %v3791_v30, %v5539_v19  ;;  %v906_v1 = vand.u32 4294901760, %v905_v32  ;;  %v5541_v19 = vand.u32 4294901760, %v3812_v49  ;;  %v3880_v30 = vsub.f32 %v52_v63, %v3849_v41  ;;  %v36_v32 = vld [vmem:[%s5358_s1 + $0x78] sm:$0xff] }
  0x8a   :  { %1004 = vmatpush.msrb.mxu3 %v3741_v59  ;;  %1015 = vmatpush.msra.mxu0 %v5540_v43  ;;  %v40_v59 = vld [vmem:[%s5358_s1 + $0x98] sm:$0xff]  ;;  %v5543_v63 = vand.u32 4294901760, %v3831_v45  ;;  %v3895_v27 = vsub.f32 %v48_v7, %v3867_v40 }
  0x8b   :  { %895 = vmatpush.msrb.mxu1 %v894_v8  ;;  %966 = vmatpush.msrb.mxu2 %v3784_v48  ;;  %v1186_v18 = vsub.f32 %v3812_v49, %v5541_v19  ;;  %v5421_v8 = vand.u32 4294901760, %v3856_v57  ;;  %v1181_v43 = vand.u32 4294901760, %v1180_v24  ;;  %v3897_v61 = vand.u32 4294901760, %v40_v59  ;;  %v24_v7 = vld [vmem:[%s5358_s1 + $0x18] sm:$0xff] }
  0x8c   :  { %1164 = vmatpush.msra.mxu3 %v1163_v10  ;;  %1019 = vmatpush.msra.mxu0 %v5542_v4  ;;  %v912_v10 = vand.u32 4294901760, %v911_v33  ;;  %v1192_v19 = vsub.f32 %v3831_v45, %v5543_v63  ;;  %v5544_v33 = vand.u32 4294901760, %v3557_v15  ;;  %v5545_v4 = vand.u32 4294901760, %v3838_v6 }
  0x8d   :  { %1119 = vmatpush.msra.mxu2 %v3688_v39  ;;  %901 = vmatpush.msrb.mxu1 %v900_v36  ;;  %v32_v36 = vld [vmem:[%s5358_s1 + $0x58] sm:$0xff]  ;;  %v1187_v24 = vand.u32 4294901760, %v1186_v18  ;;  %v3910_v63 = vsub.f32 %v44_v22, %v3882_v12  ;;  %v3912_v15 = vand.u32 4294901760, %v36_v32  ;;  %v1215_v22 = vand.u32 4294901760, %v3895_v27 }
  0x8e   :  { %1170 = vmatpush.msra.mxu3 %v1169_v50  ;;  %1023 = vmatpush.msra.mxu0 %v5544_v33  ;;  %v1198_v50 = vsub.f32 %v3838_v6, %v5545_v4  ;;  %v5546_v33 = vand.u32 4294901760, %v3569_v35  ;;  %v1204_v4 = vsub.f32 %v3856_v57, %v5421_v8  ;;  %v28_v18 = vld [vmem:[%s5358_s1 + $0x38] sm:$0xff]  ;;  %v3927_v35 = vand.u32 4294901760, %v32_v36 }
  0x8f   :  { %1121 = vmatpush.msra.mxu2 %v3708_v47  ;;  %907 = vmatpush.msrb.mxu1 %v906_v1  ;;  %v3925_v1 = vsub.f32 %v40_v59, %v3897_v61 }
  0x90   :  { %1176 = vmatpush.msra.mxu3 %v1175_v13  ;;  %1027 = vmatpush.msra.mxu0 %v5546_v33  ;;  %v1193_v13 = vand.u32 4294901760, %v1192_v19  ;;  %v5547_v33 = vand.u32 4294901760, %v3588_v37  ;;  %v1199_v8 = vand.u32 4294901760, %v1198_v50  ;;  %v3941_v19 = vsub.f32 %v36_v32, %v3912_v15 }
  0x91   :  { %1123 = vmatpush.msra.mxu2 %v3725_v5  ;;  %913 = vmatpush.msrb.mxu1 %v912_v10  ;;  %v5548_v10 = vand.u32 4294901760, %v3880_v30  ;;  %v3943_v37 = vand.u32 4294901760, %v28_v18  ;;  %v1205_v50 = vand.u32 4294901760, %v1204_v4  ;;  %v3954_v32 = vsub.f32 %v32_v36, %v3927_v35 }
  0x92   :  { %1182 = vmatpush.msra.mxu3 %v1181_v43  ;;  %1031 = vmatpush.msra.mxu0 %v5547_v33  ;;  %v1221_v43 = vand.u32 4294901760, %v3910_v63  ;;  %v1227_v33 = vand.u32 4294901760, %v3925_v1 }
  0x93   :  { %1082 = vmatpush.msra.mxu1 %v3503_v54  ;;  %1125 = vmatpush.msra.mxu2 %v3755_v55  ;;  %v1210_v59 = vsub.f32 %v3880_v30, %v5548_v10  ;;  %v5549_v54 = vand.u32 4294901760, %v3604_v3  ;;  %v3956_v10 = vand.u32 4294901760, %v24_v7  ;;  %v5550_v3 = vand.u32 4294901760, %v3610_v11 }
  0x94   :  { %1188 = vmatpush.msra.mxu3 %v1187_v24  ;;  %v1216_v24 = vsub.f32 %v3895_v27, %v1215_v22  ;;  %v1222_v4 = vsub.f32 %v3910_v63, %v1221_v43  ;;  %v3967_v36 = vsub.f32 %v28_v18, %v3943_v37  ;;  %v1228_v11 = vsub.f32 %v3925_v1, %v1227_v33 }
  0x95   :  { %1035 = vmatpush.msra.mxu0 %v5549_v54  ;;  %1084 = vmatpush.msra.mxu1 %v3519_v2  ;;  %v1211_v2 = vand.u32 4294901760, %v1210_v59  ;;  %v5551_v54 = vand.u32 4294901760, %v3626_v58  ;;  %v3978_v59 = vsub.f32 %v24_v7, %v3956_v10  ;;  %v5552_v18 = vand.u32 4294901760, %v3650_v46 }
  0x96   :  { %1127 = vmatpush.msra.mxu2 %v3774_v31  ;;  %1194 = vmatpush.msra.mxu3 %v1193_v13  ;;  %v1233_v13 = vand.u32 4294901760, %v3941_v19  ;;  %v1229_v46 = vand.u32 4294901760, %v1228_v11 }
  0x97   :  { %1039 = vmatpush.msra.mxu0 %v5550_v3  ;;  %1086 = vmatpush.msra.mxu1 %v3532_v44  ;;  %v1217_v44 = vand.u32 4294901760, %v1216_v24  ;;  %v5553_v24 = vand.u32 4294901760, %v3665_v56  ;;  %v1251_v7 = vand.u32 4294901760, %v3978_v59  ;;  %v5554_v3 = vand.u32 4294901760, %v3682_v53 }
  0x98   :  { %1129 = vmatpush.msra.mxu2 %v3793_v29  ;;  %1200 = vmatpush.msra.mxu3 %v1199_v8  ;;  %v1239_v8 = vand.u32 4294901760, %v3954_v32  ;;  %v1234_v58 = vsub.f32 %v3941_v19, %v1233_v13 }
  0x99   :  { %1043 = vmatpush.msra.mxu0 %v5551_v54  ;;  %1088 = vmatpush.msra.mxu1 %v3545_v14  ;;  %v1223_v14 = vand.u32 4294901760, %v1222_v4  ;;  %v5556_v4 = vand.u32 4294901760, %v3733_v42  ;;  %v5557_v54 = vand.u32 4294901760, %v3753_v38  ;;  %v5564_v42 = vld [vmem:[#allocation2_spill] sm:$0xff]  ;;  %v5565_v38 = vld [vmem:[#allocation9_spill] sm:$0xff] }
  0x9a   :  { %1131 = vmatpush.msra.mxu2 %v3803_v62  ;;  %1206 = vmatpush.msra.mxu3 %v1205_v50  ;;  %v1245_v50 = vand.u32 4294901760, %v3967_v36  ;;  %v1235_v56 = vand.u32 4294901760, %v1234_v58  ;;  %v5570_v58 = vand.u32 4294901760, %v5565_v38 }
  0x9b   :  { %1047 = vmatpush.msra.mxu0 %v5552_v18  ;;  %1090 = vmatpush.msra.mxu1 %v3559_v25  ;;  %v1240_v25 = vsub.f32 %v3954_v32, %v1239_v8  ;;  %v5568_v18 = vld [vmem:[#allocation3_spill] sm:$0xff] }
  0x9c   :  { %1133 = vmatpush.msra.mxu2 %v3819_v20  ;;  %1212 = vmatpush.msra.mxu3 %v1211_v2  ;;  %v5555_v2 = vand.u32 4294901760, %v3702_v23 }
  0x9d   :  { %1051 = vmatpush.msra.mxu0 %v5553_v24  ;;  %1092 = vmatpush.msra.mxu1 %v3571_v26  ;;  %v1246_v26 = vsub.f32 %v3967_v36, %v1245_v50  ;;  %v1241_v53 = vand.u32 4294901760, %v1240_v25  ;;  %v5571_v24 = vld [vmem:[#allocation4_spill] sm:$0xff]  ;;  %v5573_v25 = vand.u32 4294901760, %v3812_v49 }
  0x9e   :  { %1135 = vmatpush.msra.mxu2 %v3849_v41  ;;  %1218 = vmatpush.msra.mxu3 %v1217_v44  ;;  %v5558_v44 = vand.u32 4294901760, %v3771_v21  ;;  %v5566_v21 = vld [vmem:[#allocation7_spill] sm:$0xff] }
  0x9f   :  { %1055 = vmatpush.msra.mxu0 %v5554_v3  ;;  %1094 = vmatpush.msra.mxu1 %v3583_v60  ;;  %v1252_v60 = vsub.f32 %v3978_v59, %v1251_v7  ;;  %v1247_v23 = vand.u32 4294901760, %v1246_v26  ;;  %v1473_v26 = vld [vmem:[%s5361_s3 + $0x50] sm:$0xff] }
  0xa0   :  { %1137 = vmatpush.msra.mxu2 %v3867_v40  ;;  %1224 = vmatpush.msra.mxu3 %v1223_v14  ;;  %v5569_v14 = vld [vmem:[#allocation10_spill] sm:$0xff] }
  0xa1   :  { %1059 = vmatpush.msra.mxu0 %v5555_v2  ;;  %1096 = vmatpush.msra.mxu1 %v3593_v16  ;;  %v1253_v16 = vand.u32 4294901760, %v1252_v60  ;;  %v4166_v2 = vand.u32 4294901760, %v1473_v26 }
  0xa2   :  { %1139 = vmatpush.msra.mxu2 %v3882_v12  ;;  %1230 = vmatpush.msra.mxu3 %v1229_v46  ;;  %v5572_v46 = vand.u32 4294901760, %v5569_v14 }
  0xa3   :  { %1063 = vmatpush.msra.mxu0 %v5556_v4  ;;  %1098 = vmatpush.msra.mxu1 %v3620_v17  ;;  %v5559_v17 = vand.u32 4294901760, %v3784_v48  ;;  %v5562_v48 = vld [vmem:[#allocation8_spill] sm:$0xff] }
  0xa4   :  { %1141 = vmatpush.msra.mxu2 %v3897_v61  ;;  %1236 = vmatpush.msra.mxu3 %v1235_v56  ;;  %v5567_v11 = vand.u32 4294901760, %v5562_v48 }
  0xa5   :  { %1067 = vmatpush.msra.mxu0 %v5557_v54  ;;  %1100 = vmatpush.msra.mxu1 %v3636_v0  ;;  %v5560_v0 = vld [vmem:[#allocation6_spill] sm:$0xff] }
  0xa6   :  { %1143 = vmatpush.msra.mxu2 %v3912_v15  ;;  %1242 = vmatpush.msra.mxu3 %v1241_v53 }
  0xa7   :  { %1071 = vmatpush.msra.mxu0 %v5558_v44  ;;  %1102 = vmatpush.msra.mxu1 %v3652_v52  ;;  %v5561_v52 = vld [vmem:[#allocation5_spill] sm:$0xff]  ;;  %v4198_v44 = vsub.f32 %v1473_v26, %v4166_v2 }
  0xa8   :  { %1145 = vmatpush.msra.mxu2 %v3927_v35  ;;  %1248 = vmatpush.msra.mxu3 %v1247_v23 }
  0xa9   :  { %1075 = vmatpush.msra.mxu0 %v5559_v17  ;;  %1104 = vmatpush.msra.mxu1 %v3667_v34  ;;  %v5563_v34 = vand.u32 4294901760, %v5560_v0 }
  0xaa   :  { %1147 = vmatpush.msra.mxu2 %v3943_v37  ;;  %1254 = vmatpush.msra.mxu3 %v1253_v16 }
  0xab   :  { %814 = vmatmul.f32.vlgmr.msrb.gmra.mxu0 %v3431_v28  ;;  %969 = vmatmul.f32.vlgmr.msrb.gmra.mxu2 %v3386_v9 }
  0xac   :  { %1008 = vmatmul.f32.vlgmr.msrb.gmra.mxu3 %v3405_v51  ;;  %1262 = vmatpush.msrb.mxu0 %v5560_v0 }
  0xad   :  { %1423 = vmatpush.msrb.mxu3 %v3688_v39  ;;  %1106 = vmatpush.msra.mxu1 %v5561_v52 }
  0xae   :  { %1149 = vmatpush.msra.mxu2 %v3956_v10  ;;  %1265 = vmatpush.msrb.mxu0 %v5562_v48 }
  0xaf   :  { %1425 = vmatpush.msrb.mxu3 %v3708_v47  ;;  %1108 = vmatpush.msra.mxu1 %v5564_v42 }
  0xb0   :  { %1356 = vmatpush.msrb.mxu2 %v5563_v34  ;;  %1268 = vmatpush.msrb.mxu0 %v5565_v38  ;;  %v1469_v34 = vld [vmem:[%s5361_s3 + $0x30] sm:$0xff] }
  0xb1   :  { %915 = vmatmul.f32.vlgmr.msrb.gmra.mxu1 %v5566_v21  ;;  %1427 = vmatpush.msrb.mxu3 %v3725_v5 }
  0xb2   :  { %1360 = vmatpush.msrb.mxu2 %v5567_v11  ;;  %1110 = vmatpush.msra.mxu1 %v5568_v18  ;;  %v1468_v18 = vld [vmem:[%s5361_s3 + $0x28] sm:$0xff] }
  0xb3   :  { %1271 = vmatpush.msrb.mxu0 %v5569_v14  ;;  %1429 = vmatpush.msrb.mxu3 %v3755_v55 }
  0xb4   :  { %1364 = vmatpush.msrb.mxu2 %v5570_v58  ;;  %1112 = vmatpush.msra.mxu1 %v5571_v24  ;;  %v4232_v24 = vand.u32 4294901760, %v1469_v34 }
  0xb5   :  { %1274 = vmatpush.msrb.mxu0 %v3812_v49  ;;  %1431 = vmatpush.msrb.mxu3 %v3774_v31  ;;  %v1476_v49 = vld [vmem:[%s5361_s3 + $0x68] sm:$0xff] }
  0xb6   :  { %1315 = vmatpush.msrb.mxu1 %v3688_v39  ;;  %1368 = vmatpush.msrb.mxu2 %v5572_v46  ;;  %v5574_v39 = vand.u32 4294901760, %v3831_v45  ;;  %v1467_v46 = vld [vmem:[%s5361_s3 + $0x20] sm:$0xff] }
  0xb7   :  { %1077 = vmatmul.f32.vlgmr.msra.gmra.mxu0 %v5566_v21  ;;  %1433 = vmatpush.msrb.mxu3 %v3793_v29 }
  0xb8   :  { %1317 = vmatpush.msrb.mxu1 %v3708_v47  ;;  %1277 = vmatpush.msrb.mxu0 %v3831_v45  ;;  %v5575_v47 = vand.u32 4294901760, %v3838_v6  ;;  %v5577_v45 = vand.u32 4294901760, %v3856_v57 }
  0xb9   :  { %1372 = vmatpush.msrb.mxu2 %v5573_v25  ;;  %1114 = vmatmul.f32.vlgmr.msra.gmra.mxu1 %v5566_v21 }
  0xba   :  { %1280 = vmatpush.msrb.mxu0 %v3838_v6  ;;  %1319 = vmatpush.msrb.mxu1 %v3725_v5  ;;  %v4076_v5 = vld [vmem:[%s5360_s2] sm:$0xf]  ;;  %v5578_v6 = vand.u32 4294901760, %v3880_v30 }
  0xbb   :  { %1376 = vmatpush.msrb.mxu2 %v5574_v39  ;;  %1435 = vmatpush.msrb.mxu3 %v3803_v62  ;;  %5576 = vst [vmem:[#allocation6_spill] sm:$0xff] %v4076_v5 }
  0xbc   :  { %1283 = vmatpush.msrb.mxu0 %v3856_v57  ;;  %1321 = vmatpush.msrb.mxu1 %v3755_v55  ;;  %v87_v55 = vperm.slane %v4076_v5, 0 }
  0xbd   :  { %1380 = vmatpush.msrb.mxu2 %v5575_v47  ;;  %1437 = vmatpush.msrb.mxu3 %v3819_v20 }
  0xbe   :  { %1286 = vmatpush.msrb.mxu0 %v3880_v30  ;;  %1323 = vmatpush.msrb.mxu1 %v3774_v31  ;;  %v1478_v31 = vld [vmem:[%s5361_s3 + $0x78] sm:$0xff]  ;;  %v1477_v30 = vld [vmem:[%s5361_s3 + $0x70] sm:$0xff] }
  0xbf   :  { %1384 = vmatpush.msrb.mxu2 %v5577_v45  ;;  %1439 = vmatpush.msrb.mxu3 %v3849_v41  ;;  %v4247_v45 = vand.u32 4294901760, %v1468_v18 }
  0xc0   :  { %1289 = vmatpush.msrb.mxu0 %v3895_v27  ;;  %1325 = vmatpush.msrb.mxu1 %v3793_v29  ;;  %v4100_v29 = vand.u32 4294901760, %v1478_v31  ;;  %v4107_v27 = vand.u32 4294901760, %v1477_v30 }
  0xc1   :  { %1388 = vmatpush.msrb.mxu2 %v5578_v6  ;;  %1441 = vmatpush.msrb.mxu3 %v3867_v40  ;;  %v133_v57 = vpop.f32.mrf.mxu0 }
  0xc2   :  { %1292 = vmatpush.msrb.mxu0 %v3910_v63  ;;  %1327 = vmatpush.msrb.mxu1 %v3803_v62  ;;  %v134_v62 = vadd.f32 %v133_v57, %v87_v55  ;;  %v1466_v57 = vld [vmem:[%s5361_s3 + $0x18] sm:$0xff] }
  0xc3   :  { %1392 = vmatpush.msrb.mxu2 %v1215_v22  ;;  %1443 = vmatpush.msrb.mxu3 %v3882_v12 }
  0xc4   :  { %1295 = vmatpush.msrb.mxu0 %v3925_v1  ;;  %1329 = vmatpush.msrb.mxu1 %v3819_v20  ;;  %v4118_v20 = vsub.f32 %v1478_v31, %v4100_v29  ;;  %v4126_v1 = vand.u32 4294901760, %v1476_v49  ;;  %v4252_v31 = vand.u32 4294901760, %v1467_v46 }
  0xc5   :  { %1396 = vmatpush.msrb.mxu2 %v1221_v43  ;;  %1445 = vmatpush.msrb.mxu3 %v3897_v61 }
  0xc6   :  { %1298 = vmatpush.msrb.mxu0 %v3941_v19  ;;  %1331 = vmatpush.msrb.mxu1 %v3849_v41  ;;  %v1475_v41 = vld [vmem:[%s5361_s3 + $0x60] sm:$0xff]  ;;  %v5435_v56 = vand.u32 4294901760, %v4118_v20  ;;  %v4292_v26 = vsub.f32 %v1467_v46, %v4252_v31 }
  0xc7   :  { %1400 = vmatpush.msrb.mxu2 %v1227_v33  ;;  %1447 = vmatpush.msrb.mxu3 %v3912_v15  ;;  %v234_v63 = vpop.f32.mrf.mxu1  ;;  %v4134_v33 = vsub.f32 %v1477_v30, %v4107_v27  ;;  %v4139_v19 = vand.u32 4294901760, %v1475_v41 }
  0xc8   :  { %1301 = vmatpush.msrb.mxu0 %v3954_v32  ;;  %1333 = vmatpush.msrb.mxu1 %v3867_v40  ;;  %v288_v22 = vpop.f32.mrf.mxu2  ;;  %v235_v43 = vadd.f32 %v234_v63, %v134_v62  ;;  %v1474_v40 = vld [vmem:[%s5361_s3 + $0x58] sm:$0xff]  ;;  %v4153_v32 = vsub.f32 %v1476_v49, %v4126_v1  ;;  %v1575_v53 = vsub.f32 %v4118_v20, %v5435_v56 }
  0xc9   :  { %1404 = vmatpush.msrb.mxu2 %v1233_v13  ;;  %1449 = vmatpush.msrb.mxu3 %v3927_v35  ;;  %v4143_v3 = vand.u32 4294901760, %v1474_v40  ;;  %v4267_v49 = vsub.f32 %v1469_v34, %v4232_v24 }
  0xca   :  { %1304 = vmatpush.msrb.mxu0 %v3967_v36  ;;  %1335 = vmatpush.msrb.mxu1 %v3882_v12  ;;  %v289_v13 = vadd.f32 %v288_v22, %v235_v43  ;;  %v327_v12 = vpop.f32.mrf.mxu3  ;;  %v4164_v36 = vsub.f32 %v1475_v41, %v4139_v19  ;;  %v5431_v54 = vand.u32 4294901760, %v4153_v32  ;;  %v4277_v43 = vsub.f32 %v1468_v18, %v4247_v45 }
  0xcb   :  { %1408 = vmatpush.msrb.mxu2 %v1239_v8  ;;  %1451 = vmatpush.msrb.mxu3 %v3943_v37  ;;  %v1472_v8 = vld [vmem:[%s5361_s3 + $0x48] sm:$0xff]  ;;  %v4178_v60 = vsub.f32 %v1474_v40, %v4143_v3  ;;  %v4279_v40 = vand.u32 4294901760, %v1466_v57 }
  0xcc   :  { %1307 = vmatpush.msrb.mxu0 %v3978_v59  ;;  %1337 = vmatpush.msrb.mxu1 %v3897_v61  ;;  %v5434_v61 = vand.u32 4294901760, %v4134_v33  ;;  %v4182_v23 = vand.u32 4294901760, %v1472_v8  ;;  %v5430_v17 = vand.u32 4294901760, %v4164_v36  ;;  %v1587_v42 = vsub.f32 %v4153_v32, %v5431_v54 }
  0xcd   :  { %1412 = vmatpush.msrb.mxu2 %v1245_v50  ;;  %1453 = vmatpush.msrb.mxu3 %v3956_v10  ;;  %v328_v50 = vadd.f32 %v327_v12, %v289_v13  ;;  %v396_v4 = vpop.f32.mrf.mxu0  ;;  %v5429_v48 = vand.u32 4294901760, %v4178_v60  ;;  %5579 = vst [vmem:[#allocation5_spill] sm:$0xff] %v4279_v40  ;;  %v5422_v34 = vand.u32 4294901760, %v4277_v43 }
  0xce   :  { %1155 = vmatmul.f32.vlgmr.msra.gmra.mxu2 %v3431_v28  ;;  %1256 = vmatmul.f32.vlgmr.msra.gmra.mxu3 %v5566_v21  ;;  %v1471_v28 = vld [vmem:[%s5361_s3 + $0x40] sm:$0xff]  ;;  %v1581_v59 = vsub.f32 %v4134_v33, %v5434_v61  ;;  %v1593_v58 = vsub.f32 %v4164_v36, %v5430_v17  ;;  %v1588_v47 = vand.u32 4294901760, %v1587_v42 }
  0xcf   :  { %1532 = vmatpush.msra.mxu0 %v4100_v29  ;;  %1728 = vmatpush.msra.mxu3 %v4100_v29  ;;  %v397_v16 = vadd.f32 %v396_v4, %v328_v50  ;;  %v1599_v25 = vsub.f32 %v4178_v60, %v5429_v48 }
  0xd0   :  { %1339 = vmatpush.msrb.mxu1 %v3912_v15  ;;  %1416 = vmatpush.msrb.mxu2 %v1251_v7  ;;  %v1470_v15 = vld [vmem:[%s5361_s3 + $0x38] sm:$0xff]  ;;  %v4193_v7 = vand.u32 4294901760, %v1471_v28  ;;  %v433_v0 = vpop.f32.mrf.mxu1  ;;  %v1582_v38 = vand.u32 4294901760, %v1581_v59 }
  0xd1   :  { %1534 = vmatpush.msra.mxu0 %v4107_v27  ;;  %1730 = vmatpush.msra.mxu3 %v4107_v27  ;;  %v4203_v52 = vand.u32 4294901760, %v1470_v15  ;;  %v4227_v14 = vadd.f32 %v433_v0, %v397_v16  ;;  %v1600_v63 = vand.u32 4294901760, %v1599_v25  ;;  %v1492_v16 = vld [vmem:[%s5361_s3 + $0xe8] sm:$0xff]  ;;  %v4316_v0 = vsub.f32 %v1466_v57, %v4279_v40  ;;  %v1463_v57 = vld [vmem:[%s5361_s3] sm:$0xff] }
  0xd2   :  { %1675 = vmatpush.msra.mxu2 %v4118_v20  ;;  %1341 = vmatpush.msrb.mxu1 %v3927_v35  ;;  %v1576_v35 = vand.u32 4294901760, %v1575_v53  ;;  %v4220_v11 = vsub.f32 %v1471_v28, %v4193_v7  ;;  %v1465_v28 = vld [vmem:[%s5361_s3 + $0x10] sm:$0xff]  ;;  %v5423_v53 = vand.u32 4294901760, %v4267_v49 }
  0xd3   :  { %1536 = vmatpush.msra.mxu0 %v4126_v1  ;;  %1732 = vmatpush.msra.mxu3 %v4126_v1  ;;  %v4243_v39 = vsub.f32 %v1470_v15, %v4203_v52  ;;  %v1459_v30 = vmax.f32 %v4227_v14, 0.0  ;;  %v1464_v15 = vld [vmem:[%s5361_s3 + $0x8] sm:$0xff]  ;;  %v4324_v18 = vand.u32 4294901760, %v1465_v28  ;;  %v5426_v14 = vand.u32 4294901760, %v4292_v26 }
  0xd4   :  { %1678 = vmatpush.msra.mxu2 %v4134_v33  ;;  %1343 = vmatpush.msrb.mxu1 %v3943_v37  ;;  %v4215_v37 = vsub.f32 %v1472_v8, %v4182_v23  ;;  %v5425_v55 = vand.u32 4294901760, %v4220_v11  ;;  %v1629_v25 = vsub.f32 %v4267_v49, %v5423_v53 }
  0xd5   :  { %1538 = vmatpush.msra.mxu0 %v4139_v19  ;;  %1734 = vmatpush.msra.mxu3 %v4139_v19  ;;  %v5424_v41 = vand.u32 4294901760, %v4243_v39  ;;  %v4294_v8 = vand.u32 4294901760, %v1459_v30  ;;  %5581 = vst [vmem:[#allocation2_spill] sm:$0xff] %v4324_v18 }
  0xd6   :  { %1681 = vmatpush.msra.mxu2 %v4153_v32  ;;  %1345 = vmatpush.msrb.mxu1 %v3956_v10  ;;  %v5428_v10 = vand.u32 4294901760, %v4198_v44  ;;  %v5427_v6 = vand.u32 4294901760, %v4215_v37  ;;  %v1617_v12 = vsub.f32 %v4220_v11, %v5425_v55  ;;  %v1630_v53 = vand.u32 4294901760, %v1629_v25 }
  0xd7   :  { %1418 = vmatmul.f32.vlgmr.msrb.gmra.mxu2 %v5566_v21  ;;  %1540 = vmatpush.msra.mxu0 %v4143_v3  ;;  %v1623_v4 = vsub.f32 %v4243_v39, %v5424_v41  ;;  %v4331_v46 = vsub.f32 %v1459_v30, %v4294_v8 }
  0xd8   :  { %1577 = vmatpush.msra.mxu1 %v1576_v35  ;;  %1684 = vmatpush.msra.mxu2 %v4164_v36  ;;  %v1605_v62 = vsub.f32 %v4198_v44, %v5428_v10  ;;  %v1611_v22 = vsub.f32 %v4215_v37, %v5427_v6  ;;  %v88_v6 = vperm.slane %v4076_v5, 1 }
  0xd9   :  { %1736 = vmatpush.msra.mxu3 %v4143_v3  ;;  %1310 = vmatmul.f32.vlgmr.msrb.gmra.mxu0 %v3386_v9  ;;  %v1494_v9 = vld [vmem:[%s5361_s3 + $0xf8] sm:$0xff]  ;;  %v1624_v30 = vand.u32 4294901760, %v1623_v4  ;;  %v4365_v4 = vand.u32 4294901760, %v1463_v57 }
  0xda   :  { %1455 = vmatmul.f32.vlgmr.msrb.gmra.mxu3 %v5566_v21  ;;  %1542 = vmatpush.msra.mxu0 %v4166_v2  ;;  %v1594_v21 = vand.u32 4294901760, %v1593_v58  ;;  %v4281_v13 = vand.u32 4294901760, %v1494_v9  ;;  %v1606_v50 = vand.u32 4294901760, %v1605_v62  ;;  %v1612_v35 = vand.u32 4294901760, %v1611_v22  ;;  %v1491_v58 = vld [vmem:[%s5361_s3 + $0xe0] sm:$0xff] }
  0xdb   :  { %1583 = vmatpush.msra.mxu1 %v1582_v38  ;;  %1687 = vmatpush.msra.mxu2 %v4178_v60  ;;  %v1618_v38 = vand.u32 4294901760, %v1617_v12  ;;  %v1635_v62 = vsub.f32 %v4277_v43, %v5422_v34  ;;  %v5433_v22 = vand.u32 4294901760, %v4316_v0  ;;  %v4355_v12 = vand.u32 4294901760, %v1491_v58  ;;  %5584 = vst [vmem:[#allocation3_spill] sm:$0xff] %v4365_v4 }
  0xdc   :  { %1738 = vmatpush.msra.mxu3 %v4166_v2  ;;  %1349 = vmatmul.f32.vlgmr.msrb.gmra.mxu1 %v3405_v51  ;;  %v1493_v51 = vld [vmem:[%s5361_s3 + $0xf0] sm:$0xff]  ;;  %v4320_v42 = vsub.f32 %v1494_v9, %v4281_v13  ;;  %v4342_v9 = vand.u32 4294901760, %v1492_v16  ;;  %v5436_v34 = vand.u32 4294901760, %v4331_v46  ;;  %v4403_v54 = vsub.f32 %v1463_v57, %v4365_v4 }
  0xdd   :  { %1544 = vmatpush.msra.mxu0 %v4182_v23  ;;  %1589 = vmatpush.msra.mxu1 %v1588_v47  ;;  %v4309_v59 = vand.u32 4294901760, %v1493_v51  ;;  %v4337_v47 = vand.u32 4294901760, %v1464_v15  ;;  %v1647_v10 = vsub.f32 %v4316_v0, %v5433_v22  ;;  %v4398_v48 = vsub.f32 %v1491_v58, %v4355_v12 }
  0xde   :  { %1690 = vmatpush.msra.mxu2 %v4198_v44  ;;  %1740 = vmatpush.msra.mxu3 %v4182_v23  ;;  %5580 = vst [vmem:[#allocation8_spill] sm:$0xff] %v4320_v42  ;;  %v4376_v55 = vsub.f32 %v1492_v16, %v4342_v9  ;;  %v1636_v16 = vand.u32 4294901760, %v1635_v62  ;;  %v1566_v58 = vsub.f32 %v4331_v46, %v5436_v34 }
  0xdf   :  { %1546 = vmatpush.msra.mxu0 %v4193_v7  ;;  %1595 = vmatpush.msra.mxu1 %v1594_v21  ;;  %5582 = vst [vmem:[#allocation9_spill] sm:$0xff] %v4337_v47  ;;  %v4347_v21 = vsub.f32 %v1493_v51, %v4309_v59  ;;  %v4363_v51 = vsub.f32 %v1465_v28, %v4324_v18  ;;  %v1489_v28 = vld [vmem:[%s5361_s3 + $0xd0] sm:$0xff]  ;;  %v1648_v57 = vand.u32 4294901760, %v1647_v10 }
  0xe0   :  { %1693 = vmatpush.msra.mxu2 %v4215_v37  ;;  %1742 = vmatpush.msra.mxu3 %v4193_v7  ;;  %v4373_v41 = vsub.f32 %v1464_v15, %v4337_v47  ;;  %5585 = vst [vmem:[#allocation10_spill] sm:$0xff] %v4376_v55  ;;  %v1488_v15 = vld [vmem:[%s5361_s3 + $0xc8] sm:$0xff]  ;;  %v4406_v62 = vand.u32 4294901760, %v1489_v28 }
  0xe1   :  { %1548 = vmatpush.msra.mxu0 %v4203_v52  ;;  %1601 = vmatpush.msra.mxu1 %v1600_v63  ;;  %5583 = vst [vmem:[#allocation7_spill] sm:$0xff] %v4347_v21  ;;  %v5432_v63 = vand.u32 4294901760, %v4320_v42  ;;  %v4417_v56 = vand.u32 4294901760, %v1488_v15 }
  0xe2   :  { %1696 = vmatpush.msra.mxu2 %v4220_v11  ;;  %1744 = vmatpush.msra.mxu3 %v4203_v52  ;;  %5586 = vst [vmem:[#allocation4_spill] sm:$0xff] %v4398_v48  ;;  %v4441_v10 = vsub.f32 %v1489_v28, %v4406_v62  ;;  %v5592_v28 = vand.u32 4294901760, %v4118_v20  ;;  %v1483_v20 = vld [vmem:[%s5361_s3 + $0xa0] sm:$0xff] }
  0xe3   :  { %1550 = vmatpush.msra.mxu0 %v4232_v24  ;;  %1607 = vmatpush.msra.mxu1 %v1606_v50  ;;  %v1490_v50 = vld [vmem:[%s5361_s3 + $0xd8] sm:$0xff]  ;;  %v1916_v25 = vsub.f32 %v4320_v42, %v5432_v63  ;;  %v1487_v63 = vld [vmem:[%s5361_s3 + $0xc0] sm:$0xff] }
  0xe4   :  { %1699 = vmatpush.msra.mxu2 %v4243_v39  ;;  %1746 = vmatpush.msra.mxu3 %v4232_v24 }
  0xe5   :  { %1552 = vmatpush.msra.mxu0 %v4247_v45  ;;  %1613 = vmatpush.msra.mxu1 %v1612_v35  ;;  %v1641_v35 = vsub.f32 %v4292_v26, %v5426_v14  ;;  %v5440_v14 = vand.u32 4294901760, %v4347_v21 }
  0xe6   :  { %1702 = vmatpush.msra.mxu2 %v4267_v49  ;;  %1748 = vmatpush.msra.mxu3 %v4247_v45 }
  0xe7   :  { %1554 = vmatpush.msra.mxu0 %v4252_v31  ;;  %1619 = vmatpush.msra.mxu1 %v1618_v38  ;;  %v4385_v38 = vand.u32 4294901760, %v1490_v50  ;;  %v1642_v17 = vand.u32 4294901760, %v1641_v35  ;;  %v5588_v35 = vand.u32 4294901760, %v4376_v55 }
  0xe8   :  { %1705 = vmatpush.msra.mxu2 %v4277_v43  ;;  %1750 = vmatpush.msra.mxu3 %v4252_v31 }
  0xe9   :  { %1556 = vmatpush.msra.mxu0 %v4279_v40  ;;  %1625 = vmatpush.msra.mxu1 %v1624_v30  ;;  %v1922_v30 = vsub.f32 %v4347_v21, %v5440_v14  ;;  %v4425_v5 = vsub.f32 %v1490_v50, %v4385_v38  ;;  %v1567_v14 = vand.u32 4294901760, %v1566_v58 }
  0xea   :  { %1708 = vmatpush.msra.mxu2 %v4292_v26  ;;  %1752 = vmatpush.msra.mxu3 %v4279_v40  ;;  %v474_v22 = vpop.f32.mrf.mxu2  ;;  %v4429_v40 = vand.u32 4294901760, %v1487_v63 }
  0xeb   :  { %1558 = vmatpush.msra.mxu0 %v4324_v18  ;;  %1631 = vmatpush.msra.mxu1 %v1630_v53  ;;  %v575_v61 = vpop.f32.mrf.mxu3  ;;  %v475_v34 = vadd.f32 %v474_v22, %v88_v6  ;;  %v1917_v53 = vand.u32 4294901760, %v1916_v25  ;;  %v5587_v6 = vand.u32 4294901760, %v4363_v51  ;;  %v1485_v25 = vld [vmem:[%s5361_s3 + $0xb0] sm:$0xff] }
  0xec   :  { %1711 = vmatpush.msra.mxu2 %v4316_v0  ;;  %1754 = vmatpush.msra.mxu3 %v4324_v18  ;;  %v1486_v18 = vld [vmem:[%s5361_s3 + $0xb8] sm:$0xff]  ;;  %v4467_v21 = vsub.f32 %v1487_v63, %v4429_v40  ;;  %v4469_v42 = vand.u32 4294901760, %v1485_v25 }
  0xed   :  { %1560 = vmatpush.msra.mxu0 %v4337_v47  ;;  %1637 = vmatpush.msra.mxu1 %v1636_v16  ;;  %v1653_v22 = vsub.f32 %v4363_v51, %v5587_v6  ;;  %v576_v16 = vadd.f32 %v575_v61, %v475_v34  ;;  %v5589_v6 = vand.u32 4294901760, %v4373_v41  ;;  %v4454_v61 = vsub.f32 %v1488_v15, %v4417_v56 }
  0xee   :  { %1714 = vmatpush.msra.mxu2 %v4363_v51  ;;  %1756 = vmatpush.msra.mxu3 %v4337_v47  ;;  %v1928_v47 = vsub.f32 %v4376_v55, %v5588_v35  ;;  %v1923_v34 = vand.u32 4294901760, %v1922_v30  ;;  %v4459_v58 = vand.u32 4294901760, %v1486_v18  ;;  %v5590_v35 = vand.u32 4294901760, %v4331_v46  ;;  %v1484_v30 = vld [vmem:[%s5361_s3 + $0xa8] sm:$0xff] }
  0xef   :  { %1562 = vmatpush.msra.mxu0 %v4365_v4  ;;  %1643 = vmatpush.msra.mxu1 %v1642_v17  ;;  %v1659_v50 = vsub.f32 %v4373_v41, %v5589_v6  ;;  %v5591_v55 = vand.u32 4294901760, %v4398_v48 }
  0xf0   :  { %1717 = vmatpush.msra.mxu2 %v4373_v41  ;;  %1758 = vmatpush.msra.mxu3 %v4365_v4  ;;  %v629_v17 = vpop.f32.mrf.mxu0  ;;  %v1929_v63 = vand.u32 4294901760, %v1928_v47  ;;  %v4492_v47 = vsub.f32 %v1486_v18, %v4459_v58 }
  0xf1   :  { %1568 = vmatmul.f32.vlgmr.msra.gmra.mxu0 %v1567_v14  ;;  %1762 = vmatmul.f32.vlgmr.msra.gmra.mxu3 %v5590_v35  ;;  %v1934_v6 = vsub.f32 %v4398_v48, %v5591_v55  ;;  %v630_v15 = vadd.f32 %v629_v17, %v576_v16  ;;  %v1654_v14 = vand.u32 4294901760, %v1653_v22  ;;  %v5593_v35 = vand.u32 4294901760, %v4403_v54 }
  0xf2   :  { %1769 = vmatpush.msrb.mxu0 %v5592_v28  ;;  %1918 = vmatpush.msrb.mxu3 %v1917_v53  ;;  %v5451_v55 = vand.u32 4294901760, %v4441_v10  ;;  %v1660_v16 = vand.u32 4294901760, %v1659_v50  ;;  %v5594_v53 = vand.u32 4294901760, %v4134_v33  ;;  %v5595_v22 = vand.u32 4294901760, %v4425_v5 }
  0xf3   :  { %v1665_v4 = vsub.f32 %v4403_v54, %v5593_v35  ;;  %1649 = vmatpush.msra.mxu1 %v1648_v57  ;;  %1720 = vmatpush.msra.mxu2 %v4403_v54  ;;  %v668_v48 = vpop.f32.mrf.mxu1  ;;  %v4494_v50 = vand.u32 4294901760, %v1484_v30  ;;  %v1935_v17 = vand.u32 4294901760, %v1934_v6  ;;  %v4499_v33 = vsub.f32 %v1485_v25, %v4469_v42 }
  0xf4   :  { %1723 = vmatmul.f32.vlgmr.msra.gmra.mxu2 %v4331_v46  ;;  %1773 = vmatpush.msrb.mxu0 %v5594_v53  ;;  %v1940_v57 = vsub.f32 %v4425_v5, %v5595_v22  ;;  %v669_v28 = vadd.f32 %v668_v48, %v630_v15  ;;  %v737_v35 = vpop.f32.mrf.mxu2  ;;  %v1482_v53 = vld [vmem:[%s5361_s3 + $0x98] sm:$0xff]  ;;  %v5596_v48 = vand.u32 4294901760, %v4153_v32  ;;  %v1946_v15 = vsub.f32 %v4441_v10, %v5451_v55  ;;  %v1481_v32 = vld [vmem:[%s5361_s3 + $0x90] sm:$0xff] }
  0xf5   :  { %1873 = vmatpush.msrb.mxu2 %v4281_v13  ;;  %1924 = vmatpush.msrb.mxu3 %v1923_v34  ;;  %v1666_v18 = vand.u32 4294901760, %v1665_v4  ;;  %v4509_v6 = vand.u32 4294901760, %v1483_v20  ;;  %v5597_v25 = vand.u32 4294901760, %v4454_v61  ;;  %v5598_v4 = vand.u32 4294901760, %v4164_v36  ;;  %v1480_v36 = vld [vmem:[%s5361_s3 + $0x88] sm:$0xff] }
  0xf6   :  { %1655 = vmatpush.msra.mxu1 %v1654_v14  ;;  %1777 = vmatpush.msrb.mxu0 %v5596_v48  ;;  %v738_v34 = vadd.f32 %v737_v35, %v669_v28  ;;  %v774_v46 = vpop.f32.mrf.mxu3  ;;  %v1941_v14 = vand.u32 4294901760, %v1940_v57  ;;  %v5452_v28 = vand.u32 4294901760, %v4492_v47  ;;  %v4522_v35 = vsub.f32 %v1484_v30, %v4494_v50 }
  0xf7   :  { %1875 = vmatpush.msrb.mxu2 %v4309_v59  ;;  %1930 = vmatpush.msrb.mxu3 %v1929_v63  ;;  %v1952_v22 = vsub.f32 %v4454_v61, %v5597_v25  ;;  %v4524_v63 = vand.u32 4294901760, %v1482_v53  ;;  %v5599_v48 = vand.u32 4294901760, %v4467_v21  ;;  %v5600_v57 = vand.u32 4294901760, %v4178_v60 }
  0xf8   :  { %1661 = vmatpush.msra.mxu1 %v1660_v16  ;;  %1781 = vmatpush.msrb.mxu0 %v5598_v4  ;;  %v1947_v30 = vand.u32 4294901760, %v1946_v15  ;;  %v775_v4 = vadd.f32 %v774_v46, %v738_v34  ;;  %v4537_v55 = vsub.f32 %v1483_v20, %v4509_v6  ;;  %v1479_v16 = vld [vmem:[%s5361_s3 + $0x80] sm:$0xff]  ;;  %v1964_v60 = vsub.f32 %v4492_v47, %v5452_v28 }
  0xf9   :  { %1877 = vmatpush.msrb.mxu2 %v4342_v9  ;;  %1936 = vmatpush.msrb.mxu3 %v1935_v17  ;;  %v1958_v25 = vsub.f32 %v4467_v21, %v5599_v48  ;;  %v4539_v17 = vand.u32 4294901760, %v1481_v32  ;;  %v1953_v48 = vand.u32 4294901760, %v1952_v22  ;;  %v1975_v20 = vand.u32 4294901760, %v4522_v35 }
  0xfa   :  { %1667 = vmatpush.msra.mxu1 %v1666_v18  ;;  %1785 = vmatpush.msrb.mxu0 %v5600_v57  ;;  %v4552_v46 = vsub.f32 %v1482_v53, %v4524_v63  ;;  %v4554_v18 = vand.u32 4294901760, %v1480_v36  ;;  %v5601_v15 = vand.u32 4294901760, %v4198_v44  ;;  %v1981_v57 = vand.u32 4294901760, %v4537_v55 }
  0xfb   :  { %1669 = vmatmul.f32.vlgmr.msra.gmra.mxu1 %v4294_v8  ;;  %1879 = vmatpush.msrb.mxu2 %v4355_v12  ;;  %v1959_v34 = vand.u32 4294901760, %v1958_v25  ;;  %v4565_v53 = vsub.f32 %v1481_v32, %v4539_v17  ;;  %v4567_v28 = vand.u32 4294901760, %v1479_v16  ;;  %v5603_v44 = vand.u32 4294901760, %v4215_v37 }
  0xfc   :  { %1836 = vmatpush.msrb.mxu1 %v4100_v29  ;;  %1942 = vmatpush.msrb.mxu3 %v1941_v14  ;;  %v5602_v29 = vand.u32 4294901760, %v4499_v33  ;;  %v1460_v14 = vmax.f32 %v775_v4, 0.0  ;;  %v1965_v25 = vand.u32 4294901760, %v1964_v60  ;;  %v4578_v32 = vsub.f32 %v1480_v36, %v4554_v18 }
  0xfd   :  { %1789 = vmatpush.msrb.mxu0 %v5601_v15  ;;  %1881 = vmatpush.msrb.mxu2 %v4385_v38  ;;  %v5604_v4 = vand.u32 4294901760, %v4220_v11  ;;  %v1993_v60 = vand.u32 4294901760, %v4565_v53  ;;  %v4591_v36 = vsub.f32 %v1479_v16, %v4567_v28  ;;  %v5605_v11 = vand.u32 4294901760, %v4243_v39 }
  0xfe   :  { %v1970_v22 = vsub.f32 %v4499_v33, %v5602_v29  ;;  %1838 = vmatpush.msrb.mxu1 %v4107_v27  ;;  %1948 = vmatpush.msrb.mxu3 %v1947_v30  ;;  %v1976_v27 = vsub.f32 %v4522_v35, %v1975_v20  ;;  %v1987_v30 = vand.u32 4294901760, %v4552_v46  ;;  %v5606_v29 = vand.u32 4294901760, %v4267_v49 }
  0xff   :  { %1793 = vmatpush.msrb.mxu0 %v5603_v44  ;;  %1883 = vmatpush.msrb.mxu2 %v4406_v62  ;;  %v1994_v16 = vsub.f32 %v4565_v53, %v1993_v60  ;;  %v5607_v44 = vand.u32 4294901760, %v4277_v43 }
 0x100   :  { %1840 = vmatpush.msrb.mxu1 %v4126_v1  ;;  %1954 = vmatpush.msrb.mxu3 %v1953_v48  ;;  %v1971_v37 = vand.u32 4294901760, %v1970_v22  ;;  %v4584_v1 = vand.u32 4294901760, %v1460_v14  ;;  %v1982_v48 = vsub.f32 %v4537_v55, %v1981_v57  ;;  %v1988_v15 = vsub.f32 %v4552_v46, %v1987_v30 }
 0x101   :  { %1797 = vmatpush.msrb.mxu0 %v5604_v4  ;;  %1885 = vmatpush.msrb.mxu2 %v4417_v56  ;;  %v2005_v22 = vand.u32 4294901760, %v4591_v36  ;;  %v1995_v43 = vand.u32 4294901760, %v1994_v16  ;;  %v5610_v4 = vand.u32 4294901760, %v4363_v51 }
 0x102   :  { %1842 = vmatpush.msrb.mxu1 %v4139_v19  ;;  %1960 = vmatpush.msrb.mxu3 %v1959_v34  ;;  %v1977_v19 = vand.u32 4294901760, %v1976_v27  ;;  %v1999_v34 = vand.u32 4294901760, %v4578_v32  ;;  %v4605_v39 = vsub.f32 %v1460_v14, %v4584_v1  ;;  %v1989_v49 = vand.u32 4294901760, %v1988_v15  ;;  %v5621_v15 = vld [vmem:[#allocation4_spill] sm:$0xff] }
 0x103   :  { %1801 = vmatpush.msrb.mxu0 %v5605_v11  ;;  %1887 = vmatpush.msrb.mxu2 %v4429_v40  ;;  %v5608_v14 = vand.u32 4294901760, %v4292_v26  ;;  %v5609_v27 = vand.u32 4294901760, %v4316_v0  ;;  %v5624_v16 = vand.u32 4294901760, %v5621_v15 }
 0x104   :  { %1844 = vmatpush.msrb.mxu1 %v4143_v3  ;;  %1966 = vmatpush.msrb.mxu3 %v1965_v25  ;;  %v1983_v3 = vand.u32 4294901760, %v1982_v48  ;;  %v1906_v25 = vand.u32 4294901760, %v4605_v39  ;;  %v5618_v48 = vld [vmem:[#allocation10_spill] sm:$0xff] }
 0x105   :  { %1805 = vmatpush.msrb.mxu0 %v5606_v29  ;;  %1889 = vmatpush.msrb.mxu2 %v4459_v58  ;;  %v5622_v29 = vand.u32 4294901760, %v5618_v48 }
 0x106   :  { %1846 = vmatpush.msrb.mxu1 %v4166_v2  ;;  %1972 = vmatpush.msrb.mxu3 %v1971_v37  ;;  %v2000_v2 = vsub.f32 %v4578_v32, %v1999_v34  ;;  %v5611_v37 = vand.u32 4294901760, %v4373_v41  ;;  %v5614_v41 = vld [vmem:[#allocation5_spill] sm:$0xff] }
 0x107   :  { %1809 = vmatpush.msrb.mxu0 %v5607_v44  ;;  %1891 = vmatpush.msrb.mxu2 %v4469_v42  ;;  %v5625_v44 = vand.u32 4294901760, %v4425_v5 }
 0x108   :  { %1848 = vmatpush.msrb.mxu1 %v4182_v23  ;;  %1978 = vmatpush.msrb.mxu3 %v1977_v19  ;;  %v2006_v23 = vsub.f32 %v4591_v36, %v2005_v22  ;;  %v2001_v26 = vand.u32 4294901760, %v2000_v2  ;;  %v5620_v19 = vld [vmem:[#allocation9_spill] sm:$0xff] }
 0x109   :  { %1813 = vmatpush.msrb.mxu0 %v5608_v14  ;;  %1893 = vmatpush.msrb.mxu2 %v4494_v50 }
 0x10a   :  { %1850 = vmatpush.msrb.mxu1 %v4193_v7  ;;  %1984 = vmatpush.msrb.mxu3 %v1983_v3  ;;  %v1907_v7 = vsub.f32 %v4605_v39, %v1906_v25  ;;  %v2007_v0 = vand.u32 4294901760, %v2006_v23  ;;  %v5623_v3 = vld [vmem:[#allocation3_spill] sm:$0xff] }
 0x10b   :  { %1817 = vmatpush.msrb.mxu0 %v5609_v27  ;;  %1895 = vmatpush.msrb.mxu2 %v4509_v6 }
 0x10c   :  { %1852 = vmatpush.msrb.mxu1 %v4203_v52  ;;  %1990 = vmatpush.msrb.mxu3 %v1989_v49  ;;  %v5612_v52 = vand.u32 4294901760, %v4403_v54  ;;  %v1908_v51 = vand.u32 4294901760, %v1907_v7  ;;  %v5615_v54 = vld [vmem:[#allocation7_spill] sm:$0xff] }
 0x10d   :  { %1821 = vmatpush.msrb.mxu0 %v5610_v4  ;;  %1897 = vmatpush.msrb.mxu2 %v4524_v63  ;;  %v5619_v11 = vand.u32 4294901760, %v5615_v54  ;;  %v1503_v4 = vld [vmem:[%s5361_s3 + $0x140] sm:$0xff] }
 0x10e   :  { %1854 = vmatpush.msrb.mxu1 %v4232_v24  ;;  %1996 = vmatpush.msrb.mxu3 %v1995_v43  ;;  %v5613_v24 = vld [vmem:[#allocation8_spill] sm:$0xff] }
 0x10f   :  { %1825 = vmatpush.msrb.mxu0 %v5611_v37  ;;  %1899 = vmatpush.msrb.mxu2 %v4539_v17 }
 0x110   :  { %1856 = vmatpush.msrb.mxu1 %v4247_v45  ;;  %2002 = vmatpush.msrb.mxu3 %v2001_v26  ;;  %v5616_v45 = vand.u32 4294901760, %v5613_v24 }
 0x111   :  { %1829 = vmatpush.msrb.mxu0 %v5612_v52  ;;  %1901 = vmatpush.msrb.mxu2 %v4554_v18 }
 0x112   :  { %1858 = vmatpush.msrb.mxu1 %v4252_v31  ;;  %2008 = vmatpush.msrb.mxu3 %v2007_v0  ;;  %v5617_v31 = vld [vmem:[#allocation2_spill] sm:$0xff] }
 0x113   :  { %1831 = vmatmul.f32.vlgmr.msrb.gmra.mxu0 %v4294_v8  ;;  %2010 = vmatmul.f32.vlgmr.msrb.gmra.mxu3 %v4584_v1 }
 0x114   :  { %2016 = vmatpush.msra.mxu0 %v5613_v24  ;;  %2177 = vmatpush.msra.mxu3 %v4281_v13 }
 0x115   :  { %1860 = vmatpush.msrb.mxu1 %v5614_v41  ;;  %1903 = vmatpush.msrb.mxu2 %v4567_v28  ;;  %v1501_v41 = vld [vmem:[%s5361_s3 + $0x130] sm:$0xff] }
 0x116   :  { %1909 = vmatmul.f32.vlgmr.msrb.gmra.mxu2 %v1908_v51  ;;  %2019 = vmatpush.msra.mxu0 %v5615_v54  ;;  %v4810_v51 = vand.u32 4294901760, %v1503_v4 }
 0x117   :  { %2110 = vmatpush.msra.mxu2 %v5616_v45  ;;  %2179 = vmatpush.msra.mxu3 %v4309_v59 }
 0x118   :  { %1862 = vmatpush.msrb.mxu1 %v5617_v31  ;;  %2022 = vmatpush.msra.mxu0 %v5618_v48 }
 0x119   :  { %2114 = vmatpush.msra.mxu2 %v5619_v11  ;;  %2181 = vmatpush.msra.mxu3 %v4342_v9 }
 0x11a   :  { %1864 = vmatpush.msrb.mxu1 %v5620_v19  ;;  %2025 = vmatpush.msra.mxu0 %v5621_v15  ;;  %v4833_v19 = vand.u32 4294901760, %v1501_v41 }
 0x11b   :  { %2118 = vmatpush.msra.mxu2 %v5622_v29  ;;  %2183 = vmatpush.msra.mxu3 %v4355_v12 }
 0x11c   :  { %1866 = vmatpush.msrb.mxu1 %v5623_v3  ;;  %2028 = vmatpush.msra.mxu0 %v4425_v5  ;;  %v5628_v5 = vand.u32 4294901760, %v4467_v21  ;;  %v4844_v3 = vsub.f32 %v1503_v4, %v4810_v51  ;;  %v1496_v4 = vld [vmem:[%s5361_s3 + $0x108] sm:$0xff] }
 0x11d   :  { %1868 = vmatmul.f32.vlgmr.msrb.gmra.mxu1 %v4294_v8  ;;  %2122 = vmatpush.msra.mxu2 %v5624_v16  ;;  %v5626_v8 = vand.u32 4294901760, %v4441_v10 }
 0x11e   :  { %2069 = vmatpush.msra.mxu1 %v4281_v13  ;;  %2185 = vmatpush.msra.mxu3 %v4385_v38  ;;  %v5627_v13 = vand.u32 4294901760, %v4454_v61 }
 0x11f   :  { %2031 = vmatpush.msra.mxu0 %v4441_v10  ;;  %2126 = vmatpush.msra.mxu2 %v5625_v44 }
 0x120   :  { %2071 = vmatpush.msra.mxu1 %v4309_v59  ;;  %2187 = vmatpush.msra.mxu3 %v4406_v62  ;;  %v5629_v59 = vand.u32 4294901760, %v4492_v47 }
 0x121   :  { %2034 = vmatpush.msra.mxu0 %v4454_v61  ;;  %2130 = vmatpush.msra.mxu2 %v5626_v8 }
 0x122   :  { %2073 = vmatpush.msra.mxu1 %v4342_v9  ;;  %2189 = vmatpush.msra.mxu3 %v4417_v56  ;;  %v5630_v9 = vld [vmem:[#allocation6_spill] sm:$0xff] }
 0x123   :  { %2037 = vmatpush.msra.mxu0 %v4467_v21  ;;  %2134 = vmatpush.msra.mxu2 %v5627_v13  ;;  %v89_v10 = vperm.slane %v5630_v9, 2  ;;  %v5631_v21 = vand.u32 4294901760, %v4499_v33 }
 0x124   :  { %2075 = vmatpush.msra.mxu1 %v4355_v12  ;;  %2191 = vmatpush.msra.mxu3 %v4429_v40 }
 0x125   :  { %2040 = vmatpush.msra.mxu0 %v4492_v47  ;;  %2138 = vmatpush.msra.mxu2 %v5628_v5 }
 0x126   :  { %2077 = vmatpush.msra.mxu1 %v4385_v38  ;;  %2193 = vmatpush.msra.mxu3 %v4459_v58  ;;  %v1510_v38 = vld [vmem:[%s5361_s3 + $0x178] sm:$0xff] }
 0x127   :  { %2043 = vmatpush.msra.mxu0 %v4499_v33  ;;  %2142 = vmatpush.msra.mxu2 %v5629_v59  ;;  %v4715_v47 = vand.u32 4294901760, %v1510_v38  ;;  %v1526_v59 = vld [vmem:[%s5361_s3 + $0x1f8] sm:$0xff] }
 0x128   :  { %2079 = vmatpush.msra.mxu1 %v4406_v62  ;;  %2195 = vmatpush.msra.mxu3 %v4469_v42  ;;  %v815_v12 = vpop.f32.mrf.mxu0  ;;  %v1509_v62 = vld [vmem:[%s5361_s3 + $0x170] sm:$0xff] }
 0x129   :  { %2046 = vmatpush.msra.mxu0 %v4522_v35  ;;  %2146 = vmatpush.msra.mxu2 %v5631_v21  ;;  %v816_v61 = vadd.f32 %v815_v12, %v89_v10  ;;  %v4725_v33 = vand.u32 4294901760, %v1509_v62  ;;  %v4873_v10 = vsub.f32 %v1501_v41, %v4833_v19 }
 0x12a   :  { %2081 = vmatpush.msra.mxu1 %v4417_v56  ;;  %2197 = vmatpush.msra.mxu3 %v4494_v50  ;;  %v1508_v56 = vld [vmem:[%s5361_s3 + $0x168] sm:$0xff] }
 0x12b   :  { %2049 = vmatpush.msra.mxu0 %v4537_v55  ;;  %2150 = vmatpush.msra.mxu2 %v1975_v20  ;;  %v4730_v20 = vand.u32 4294901760, %v1508_v56  ;;  %v1507_v55 = vld [vmem:[%s5361_s3 + $0x160] sm:$0xff] }
 0x12c   :  { %2083 = vmatpush.msra.mxu1 %v4429_v40  ;;  %2199 = vmatpush.msra.mxu3 %v4509_v6 }
 0x12d   :  { %2052 = vmatpush.msra.mxu0 %v4552_v46  ;;  %2154 = vmatpush.msra.mxu2 %v1981_v57  ;;  %v1506_v57 = vld [vmem:[%s5361_s3 + $0x158] sm:$0xff] }
 0x12e   :  { %2085 = vmatpush.msra.mxu1 %v4459_v58  ;;  %2201 = vmatpush.msra.mxu3 %v4524_v63  ;;  %v916_v40 = vpop.f32.mrf.mxu1  ;;  %v970_v35 = vpop.f32.mrf.mxu2  ;;  %v4738_v58 = vsub.f32 %v1510_v38, %v4715_v47 }
 0x12f   :  { %2055 = vmatpush.msra.mxu0 %v4565_v53  ;;  %2158 = vmatpush.msra.mxu2 %v1987_v30  ;;  %v917_v49 = vadd.f32 %v916_v40, %v816_v61  ;;  %v4751_v30 = vand.u32 4294901760, %v1507_v55  ;;  %v1009_v2 = vpop.f32.mrf.mxu3  ;;  %v4757_v53 = vsub.f32 %v1508_v56, %v4730_v20  ;;  %v4886_v56 = vand.u32 4294901760, %v1526_v59  ;;  %v1525_v40 = vld [vmem:[%s5361_s3 + $0x1f0] sm:$0xff] }
 0x130   :  { %2087 = vmatpush.msra.mxu1 %v4469_v42  ;;  %2203 = vmatpush.msra.mxu3 %v4539_v17  ;;  %v4749_v42 = vsub.f32 %v1509_v62, %v4725_v33  ;;  %v5466_v14 = vand.u32 4294901760, %v4738_v58  ;;  %v5456_v62 = vand.u32 4294901760, %v4844_v3 }
 0x131   :  { %2058 = vmatpush.msra.mxu0 %v4578_v32  ;;  %2162 = vmatpush.msra.mxu2 %v1993_v60  ;;  %v971_v46 = vadd.f32 %v970_v35, %v917_v49  ;;  %v4764_v60 = vand.u32 4294901760, %v1506_v57  ;;  %v5462_v26 = vand.u32 4294901760, %v4757_v53 }
 0x132   :  { %2089 = vmatpush.msra.mxu1 %v4494_v50  ;;  %2205 = vmatpush.msra.mxu3 %v4554_v18  ;;  %v1505_v50 = vld [vmem:[%s5361_s3 + $0x150] sm:$0xff]  ;;  %v5465_v23 = vand.u32 4294901760, %v4749_v42  ;;  %v2257_v7 = vsub.f32 %v4738_v58, %v5466_v14 }
 0x133   :  { %2061 = vmatpush.msra.mxu0 %v4591_v36  ;;  %2166 = vmatpush.msra.mxu2 %v1999_v34  ;;  %v1010_v32 = vadd.f32 %v1009_v2, %v971_v46  ;;  %v1504_v34 = vld [vmem:[%s5361_s3 + $0x148] sm:$0xff]  ;;  %v4777_v43 = vand.u32 4294901760, %v1505_v50  ;;  %v4793_v0 = vsub.f32 %v1506_v57, %v4764_v60  ;;  %v1497_v2 = vld [vmem:[%s5361_s3 + $0x110] sm:$0xff] }
 0x134   :  { %2091 = vmatpush.msra.mxu1 %v4509_v6  ;;  %2207 = vmatpush.msra.mxu3 %v4567_v28  ;;  %v4775_v6 = vsub.f32 %v1507_v55, %v4751_v30  ;;  %v1078_v27 = vpop.f32.mrf.mxu0  ;;  %v2258_v54 = vand.u32 4294901760, %v2257_v7  ;;  %v4917_v7 = vand.u32 4294901760, %v1525_v40 }
 0x135   :  { %2064 = vmatmul.f32.vlgmr.msra.gmra.mxu0 %v4605_v39  ;;  %2209 = vmatmul.f32.vlgmr.msra.gmra.mxu3 %v4584_v1  ;;  %v1079_v36 = vadd.f32 %v1078_v27, %v1010_v32  ;;  %v4808_v37 = vsub.f32 %v1505_v50, %v4777_v43  ;;  %v5460_v48 = vand.u32 4294901760, %v4793_v0  ;;  %v5453_v50 = vand.u32 4294901760, %v4873_v10 }
 0x136   :  { %2214 = vmatpush.msrb.mxu0 %v4715_v47  ;;  %2410 = vmatpush.msrb.mxu3 %v4715_v47  ;;  %v1115_v52 = vpop.f32.mrf.mxu1  ;;  %v5461_v24 = vand.u32 4294901760, %v4775_v6 }
 0x137   :  { %2093 = vmatpush.msra.mxu1 %v4524_v63  ;;  %2170 = vmatpush.msra.mxu2 %v2005_v22  ;;  %v4795_v63 = vand.u32 4294901760, %v1504_v34  ;;  %v2263_v22 = vsub.f32 %v4749_v42, %v5465_v23  ;;  %v4831_v11 = vadd.f32 %v1115_v52, %v1079_v36  ;;  %v5459_v16 = vand.u32 4294901760, %v4808_v37  ;;  %v1524_v36 = vld [vmem:[%s5361_s3 + $0x1e8] sm:$0xff] }
 0x138   :  { %2172 = vmatmul.f32.vlgmr.msra.gmra.mxu2 %v4584_v1  ;;  %2216 = vmatpush.msrb.mxu0 %v4725_v33  ;;  %v1502_v1 = vld [vmem:[%s5361_s3 + $0x138] sm:$0xff]  ;;  %v2275_v29 = vsub.f32 %v4775_v6, %v5461_v24  ;;  %v2281_v8 = vsub.f32 %v4793_v0, %v5460_v48 }
 0x139   :  { %2357 = vmatpush.msrb.mxu2 %v4738_v58  ;;  %2412 = vmatpush.msrb.mxu3 %v4725_v33  ;;  %v4824_v45 = vsub.f32 %v1504_v34, %v4795_v63  ;;  %v4826_v31 = vand.u32 4294901760, %v1502_v1  ;;  %v2264_v15 = vand.u32 4294901760, %v2263_v22  ;;  %v1461_v9 = vmax.f32 %v4831_v11, 0.0  ;;  %v1523_v11 = vld [vmem:[%s5361_s3 + $0x1e0] sm:$0xff] }
 0x13a   :  { %2095 = vmatpush.msra.mxu1 %v4539_v17  ;;  %2218 = vmatpush.msrb.mxu0 %v4730_v20  ;;  %v2269_v17 = vsub.f32 %v4757_v53, %v5462_v26  ;;  %v2276_v12 = vand.u32 4294901760, %v2275_v29  ;;  %v2287_v21 = vsub.f32 %v4808_v37, %v5459_v16  ;;  %v2282_v35 = vand.u32 4294901760, %v2281_v8 }
 0x13b   :  { %2360 = vmatpush.msrb.mxu2 %v4749_v42  ;;  %2414 = vmatpush.msrb.mxu3 %v4730_v20  ;;  %v4858_v13 = vsub.f32 %v1502_v1, %v4826_v31  ;;  %v5457_v39 = vand.u32 4294901760, %v4824_v45  ;;  %v4899_v57 = vand.u32 4294901760, %v1461_v9  ;;  %v2299_v34 = vsub.f32 %v4844_v3, %v5456_v62 }
 0x13c   :  { %2097 = vmatpush.msra.mxu1 %v4554_v18  ;;  %2220 = vmatpush.msrb.mxu0 %v4751_v30  ;;  %v1500_v18 = vld [vmem:[%s5361_s3 + $0x128] sm:$0xff]  ;;  %v2270_v44 = vand.u32 4294901760, %v2269_v17  ;;  %v2288_v32 = vand.u32 4294901760, %v2287_v21  ;;  %v4928_v22 = vsub.f32 %v1526_v59, %v4886_v56  ;;  %v4934_v17 = vand.u32 4294901760, %v1497_v2 }
 0x13d   :  { %2363 = vmatpush.msrb.mxu2 %v4757_v53  ;;  %2416 = vmatpush.msrb.mxu3 %v4751_v30  ;;  %v4860_v5 = vand.u32 4294901760, %v1500_v18  ;;  %v2293_v49 = vsub.f32 %v4824_v45, %v5457_v39  ;;  %v5454_v46 = vand.u32 4294901760, %v4858_v13  ;;  %v4948_v29 = vand.u32 4294901760, %v1496_v4  ;;  %v1520_v39 = vld [vmem:[%s5361_s3 + $0x1c8] sm:$0xff] }
 0x13e   :  { %2099 = vmatpush.msra.mxu1 %v4567_v28  ;;  %2222 = vmatpush.msrb.mxu0 %v4764_v60  ;;  %v1499_v28 = vld [vmem:[%s5361_s3 + $0x120] sm:$0xff]  ;;  %5633 = vst [vmem:[#allocation5_spill] sm:$0xff] %v4928_v22  ;;  %v2300_v8 = vand.u32 4294901760, %v2299_v34  ;;  %v4958_v59 = vsub.f32 %v1525_v40, %v4917_v7  ;;  %v4964_v21 = vand.u32 4294901760, %v1523_v11  ;;  %v5031_v23 = vand.u32 4294901760, %v1520_v39 }
 0x13f   :  { %2103 = vmatmul.f32.vlgmr.msra.gmra.mxu1 %v1906_v25  ;;  %2366 = vmatpush.msrb.mxu2 %v4775_v6  ;;  %v1498_v25 = vld [vmem:[%s5361_s3 + $0x118] sm:$0xff]  ;;  %v4879_v38 = vand.u32 4294901760, %v1499_v28  ;;  %v4896_v55 = vsub.f32 %v1500_v18, %v4860_v5  ;;  %v2294_v52 = vand.u32 4294901760, %v2293_v49  ;;  %v2305_v41 = vsub.f32 %v4858_v13, %v5454_v46  ;;  %5634 = vst [vmem:[#allocation7_spill] sm:$0xff] %v4934_v17 }
 0x140   :  { %2259 = vmatpush.msrb.mxu1 %v2258_v54  ;;  %2418 = vmatpush.msrb.mxu3 %v4764_v60  ;;  %v4884_v61 = vand.u32 4294901760, %v1498_v25  ;;  %v4941_v18 = vsub.f32 %v1461_v9, %v4899_v57  ;;  %5635 = vst [vmem:[#allocation2_spill] sm:$0xff] %v4948_v29  ;;  %v5463_v9 = vand.u32 4294901760, %v4928_v22  ;;  %v5471_v62 = vand.u32 4294901760, %v4958_v59 }
 0x141   :  { %2224 = vmatpush.msrb.mxu0 %v4777_v43  ;;  %2369 = vmatpush.msrb.mxu2 %v4793_v0  ;;  %v4912_v27 = vsub.f32 %v1499_v28, %v4879_v38  ;;  %v5455_v54 = vand.u32 4294901760, %v4896_v55  ;;  %v4953_v28 = vand.u32 4294901760, %v1524_v36  ;;  %5636 = vst [vmem:[#allocation10_spill] sm:$0xff] %v4958_v59  ;;  %v2306_v49 = vand.u32 4294901760, %v2305_v41 }
 0x142   :  { %2265 = vmatpush.msrb.mxu1 %v2264_v15  ;;  %2420 = vmatpush.msrb.mxu3 %v4777_v43  ;;  %5632 = vst [vmem:[#allocation8_spill] sm:$0xff] %v4884_v61  ;;  %v4925_v1 = vsub.f32 %v1498_v25, %v4884_v61  ;;  %v2311_v15 = vsub.f32 %v4873_v10, %v5453_v50  ;;  %v5467_v50 = vand.u32 4294901760, %v4941_v18 }
 0x143   :  { %2226 = vmatpush.msrb.mxu0 %v4795_v63  ;;  %2372 = vmatpush.msrb.mxu2 %v4808_v37  ;;  %v5458_v25 = vand.u32 4294901760, %v4912_v27  ;;  %v2317_v40 = vsub.f32 %v4896_v55, %v5455_v54  ;;  %v4985_v41 = vsub.f32 %v1524_v36, %v4953_v28 }
 0x144   :  { %2271 = vmatpush.msrb.mxu1 %v2270_v44  ;;  %2422 = vmatpush.msrb.mxu3 %v4795_v63  ;;  %v1495_v44 = vld [vmem:[%s5361_s3 + $0x100] sm:$0xff]  ;;  %v2312_v46 = vand.u32 4294901760, %v2311_v15 }
 0x145   :  { %2228 = vmatpush.msrb.mxu0 %v4810_v51  ;;  %2375 = vmatpush.msrb.mxu2 %v4824_v45  ;;  %v4976_v34 = vand.u32 4294901760, %v1495_v44  ;;  %5638 = vst [vmem:[#allocation4_spill] sm:$0xff] %v4985_v41  ;;  %v2323_v54 = vsub.f32 %v4912_v27, %v5458_v25  ;;  %v2318_v16 = vand.u32 4294901760, %v2317_v40 }
 0x146   :  { %2277 = vmatpush.msrb.mxu1 %v2276_v12  ;;  %2424 = vmatpush.msrb.mxu3 %v4810_v51  ;;  %v5464_v12 = vand.u32 4294901760, %v4925_v1 }
 0x147   :  { %2230 = vmatpush.msrb.mxu0 %v4826_v31  ;;  %2378 = vmatpush.msrb.mxu2 %v4844_v3  ;;  %5637 = vst [vmem:[#allocation9_spill] sm:$0xff] %v4976_v34  ;;  %v5016_v48 = vsub.f32 %v1495_v44, %v4976_v34  ;;  %v2324_v14 = vand.u32 4294901760, %v2323_v54  ;;  %v1518_v54 = vld [vmem:[%s5361_s3 + $0x1b8] sm:$0xff] }
 0x148   :  { %2283 = vmatpush.msrb.mxu1 %v2282_v35  ;;  %2426 = vmatpush.msrb.mxu3 %v4826_v31  ;;  %v1522_v35 = vld [vmem:[%s5361_s3 + $0x1d8] sm:$0xff]  ;;  %v2329_v25 = vsub.f32 %v4925_v1, %v5464_v12 }
 0x149   :  { %2232 = vmatpush.msrb.mxu0 %v4833_v19  ;;  %2381 = vmatpush.msrb.mxu2 %v4858_v13  ;;  %v4998_v36 = vand.u32 4294901760, %v1522_v35 }
 0x14a   :  { %2289 = vmatpush.msrb.mxu1 %v2288_v32  ;;  %2428 = vmatpush.msrb.mxu3 %v4833_v19  ;;  %v4974_v32 = vsub.f32 %v1497_v2, %v4934_v17  ;;  %v1521_v2 = vld [vmem:[%s5361_s3 + $0x1d0] sm:$0xff] }
 0x14b   :  { %2234 = vmatpush.msrb.mxu0 %v4860_v5  ;;  %2384 = vmatpush.msrb.mxu2 %v4873_v10  ;;  %v5019_v26 = vand.u32 4294901760, %v1521_v2 }
 0x14c   :  { %2295 = vmatpush.msrb.mxu1 %v2294_v52  ;;  %2430 = vmatpush.msrb.mxu3 %v4860_v5  ;;  %v4982_v52 = vsub.f32 %v1496_v4, %v4948_v29  ;;  %v2901_v4 = vld [vmem:[%s5360_s2] sm:$0xf] }
 0x14d   :  { %2236 = vmatpush.msrb.mxu0 %v4879_v38  ;;  %2387 = vmatpush.msrb.mxu2 %v4896_v55  ;;  %v90_v15 = vperm.slane %v2901_v4, 3  ;;  %v5012_v4 = vsub.f32 %v1523_v11, %v4964_v21  ;;  %v2248_v11 = vsub.f32 %v4941_v18, %v5467_v50  ;;  %v2604_v50 = vsub.f32 %v4958_v59, %v5471_v62 }
 0x14e   :  { %2301 = vmatpush.msrb.mxu1 %v2300_v8  ;;  %2432 = vmatpush.msrb.mxu3 %v4879_v38  ;;  %v2598_v8 = vsub.f32 %v4928_v22, %v5463_v9  ;;  %v1519_v9 = vld [vmem:[%s5361_s3 + $0x1c0] sm:$0xff]  ;;  %v5641_v22 = vand.u32 4294901760, %v4985_v41  ;;  %v5072_v59 = vand.u32 4294901760, %v1518_v54 }
 0x14f   :  { %2238 = vmatpush.msrb.mxu0 %v4884_v61  ;;  %2390 = vmatpush.msrb.mxu2 %v4912_v27  ;;  %5639 = vst [vmem:[#allocation3_spill] sm:$0xff] %v5012_v4 }
 0x150   :  { %2307 = vmatpush.msrb.mxu1 %v2306_v49  ;;  %2434 = vmatpush.msrb.mxu3 %v4884_v61  ;;  %v5038_v61 = vsub.f32 %v1522_v35, %v4998_v36  ;;  %v2599_v44 = vand.u32 4294901760, %v2598_v8  ;;  %v2330_v49 = vand.u32 4294901760, %v2329_v25  ;;  %v5640_v35 = vand.u32 4294901760, %v4974_v32  ;;  %v1517_v8 = vld [vmem:[%s5361_s3 + $0x1b0] sm:$0xff] }
 0x151   :  { %2240 = vmatpush.msrb.mxu0 %v4934_v17  ;;  %2393 = vmatpush.msrb.mxu2 %v4925_v1  ;;  %v1156_v40 = vpop.f32.mrf.mxu2  ;;  %v1257_v12 = vpop.f32.mrf.mxu3  ;;  %v5054_v25 = vsub.f32 %v1521_v2, %v5019_v26  ;;  %v2605_v2 = vand.u32 4294901760, %v2604_v50  ;;  %v1516_v50 = vld [vmem:[%s5361_s3 + $0x1a8] sm:$0xff] }
 0x152   :  { %2313 = vmatpush.msrb.mxu1 %v2312_v46  ;;  %2436 = vmatpush.msrb.mxu3 %v4934_v17  ;;  %v1157_v24 = vadd.f32 %v1156_v40, %v90_v15  ;;  %v5043_v46 = vand.u32 4294901760, %v1519_v9  ;;  %v2335_v15 = vsub.f32 %v4974_v32, %v5640_v35  ;;  %v5642_v35 = vand.u32 4294901760, %v4982_v52 }
 0x153   :  { %2242 = vmatpush.msrb.mxu0 %v4948_v29  ;;  %2396 = vmatpush.msrb.mxu2 %v4974_v32  ;;  %v5645_v40 = vand.u32 4294901760, %v4738_v58  ;;  %v1515_v58 = vld [vmem:[%s5361_s3 + $0x1a0] sm:$0xff] }
 0x154   :  { %2319 = vmatpush.msrb.mxu1 %v2318_v16  ;;  %2438 = vmatpush.msrb.mxu3 %v4948_v29  ;;  %v1258_v62 = vadd.f32 %v1257_v12, %v1157_v24  ;;  %v2249_v16 = vand.u32 4294901760, %v2248_v11  ;;  %v2610_v29 = vsub.f32 %v4985_v41, %v5641_v22  ;;  %v2341_v24 = vsub.f32 %v4982_v52, %v5642_v35 }
 0x155   :  { %2244 = vmatpush.msrb.mxu0 %v4976_v34  ;;  %2399 = vmatpush.msrb.mxu2 %v4982_v52  ;;  %v5068_v12 = vsub.f32 %v1520_v39, %v5031_v23  ;;  %v5643_v11 = vand.u32 4294901760, %v4941_v18  ;;  %v5644_v22 = vand.u32 4294901760, %v5012_v4  ;;  %v5080_v39 = vsub.f32 %v1519_v9, %v5043_v46 }
 0x156   :  { %2325 = vmatpush.msrb.mxu1 %v2324_v14  ;;  %2440 = vmatpush.msrb.mxu3 %v4976_v34  ;;  %v1311_v17 = vpop.f32.mrf.mxu0  ;;  %v5082_v14 = vand.u32 4294901760, %v1517_v8  ;;  %v2342_v9 = vand.u32 4294901760, %v2341_v24  ;;  %v5107_v24 = vand.u32 4294901760, %v1516_v50 }
 0x157   :  { %2250 = vmatmul.f32.vlgmr.msrb.gmra.mxu0 %v2249_v16  ;;  %2444 = vmatmul.f32.vlgmr.msrb.gmra.mxu3 %v5643_v11  ;;  %v2616_v35 = vsub.f32 %v5012_v4, %v5644_v22  ;;  %v1312_v41 = vadd.f32 %v1311_v17, %v1258_v62  ;;  %v2336_v16 = vand.u32 4294901760, %v2335_v15  ;;  %v5646_v11 = vand.u32 4294901760, %v5016_v48 }
 0x158   :  { %2451 = vmatpush.msra.mxu0 %v5645_v40  ;;  %2600 = vmatpush.msra.mxu3 %v2599_v44  ;;  %v5481_v62 = vand.u32 4294901760, %v5054_v25  ;;  %v2611_v17 = vand.u32 4294901760, %v2610_v29  ;;  %v5647_v44 = vand.u32 4294901760, %v4749_v42  ;;  %v5648_v15 = vand.u32 4294901760, %v5038_v61 }
 0x159   :  { %v2347_v34 = vsub.f32 %v5016_v48, %v5646_v11  ;;  %2331 = vmatpush.msrb.mxu1 %v2330_v49  ;;  %2402 = vmatpush.msrb.mxu2 %v5016_v48  ;;  %v1350_v4 = vpop.f32.mrf.mxu1  ;;  %v5105_v29 = vsub.f32 %v1518_v54, %v5072_v59  ;;  %v2617_v22 = vand.u32 4294901760, %v2616_v35  ;;  %v5112_v42 = vsub.f32 %v1517_v8, %v5082_v14 }
 0x15a   :  { %2405 = vmatmul.f32.vlgmr.msrb.gmra.mxu2 %v4941_v18  ;;  %2455 = vmatpush.msra.mxu0 %v5647_v44  ;;  %v2622_v49 = vsub.f32 %v5038_v61, %v5648_v15  ;;  %v1351_v40 = vadd.f32 %v1350_v4, %v1312_v41  ;;  %v1419_v11 = vpop.f32.mrf.mxu2  ;;  %v1514_v44 = vld [vmem:[%s5361_s3 + $0x198] sm:$0xff]  ;;  %v5649_v41 = vand.u32 4294901760, %v4757_v53  ;;  %v2628_v54 = vsub.f32 %v5054_v25, %v5481_v62  ;;  %v1513_v53 = vld [vmem:[%s5361_s3 + $0x190] sm:$0xff] }
 0x15b   :  { %2555 = vmatpush.msra.mxu2 %v4886_v56  ;;  %2606 = vmatpush.msra.mxu3 %v2605_v2  ;;  %v2348_v4 = vand.u32 4294901760, %v2347_v34  ;;  %v5122_v35 = vand.u32 4294901760, %v1515_v58  ;;  %v5650_v8 = vand.u32 4294901760, %v5068_v12  ;;  %v5651_v34 = vand.u32 4294901760, %v4775_v6  ;;  %v1512_v6 = vld [vmem:[%s5361_s3 + $0x188] sm:$0xff] }
 0x15c   :  { %2337 = vmatpush.msrb.mxu1 %v2336_v16  ;;  %2459 = vmatpush.msra.mxu0 %v5649_v41  ;;  %v1420_v2 = vadd.f32 %v1419_v11, %v1351_v40  ;;  %v2623_v16 = vand.u32 4294901760, %v2622_v49  ;;  %v5482_v40 = vand.u32 4294901760, %v5105_v29  ;;  %v5135_v11 = vsub.f32 %v1516_v50, %v5107_v24 }
 0x15d   :  { %2557 = vmatpush.msra.mxu2 %v4917_v7  ;;  %2612 = vmatpush.msra.mxu3 %v2611_v17  ;;  %v2634_v15 = vsub.f32 %v5068_v12, %v5650_v8  ;;  %v1456_v18 = vpop.f32.mrf.mxu3  ;;  %v5137_v17 = vand.u32 4294901760, %v1514_v44  ;;  %v5652_v41 = vand.u32 4294901760, %v5080_v39  ;;  %v5653_v49 = vand.u32 4294901760, %v4793_v0 }
 0x15e   :  { %2343 = vmatpush.msrb.mxu1 %v2342_v9  ;;  %2463 = vmatpush.msra.mxu0 %v5651_v34  ;;  %v2629_v50 = vand.u32 4294901760, %v2628_v54  ;;  %v1457_v34 = vadd.f32 %v1456_v18, %v1420_v2  ;;  %v5150_v62 = vsub.f32 %v1515_v58, %v5122_v35  ;;  %v1511_v9 = vld [vmem:[%s5361_s3 + $0x180] sm:$0xff]  ;;  %v2646_v0 = vsub.f32 %v5105_v29, %v5482_v40 }
 0x15f   :  { %2559 = vmatpush.msra.mxu2 %v4953_v28  ;;  %2618 = vmatpush.msra.mxu3 %v2617_v22  ;;  %v2640_v8 = vsub.f32 %v5080_v39, %v5652_v41  ;;  %v5152_v22 = vand.u32 4294901760, %v1513_v53  ;;  %v2635_v41 = vand.u32 4294901760, %v2634_v15  ;;  %v2657_v58 = vand.u32 4294901760, %v5135_v11 }
 0x160   :  { %2349 = vmatpush.msrb.mxu1 %v2348_v4  ;;  %2467 = vmatpush.msra.mxu0 %v5653_v49  ;;  %v5165_v18 = vsub.f32 %v1514_v44, %v5137_v17  ;;  %v5167_v4 = vand.u32 4294901760, %v1512_v6  ;;  %v5654_v54 = vand.u32 4294901760, %v4808_v37  ;;  %v2663_v49 = vand.u32 4294901760, %v5150_v62 }
 0x161   :  { %2351 = vmatmul.f32.vlgmr.msrb.gmra.mxu1 %v4899_v57  ;;  %2561 = vmatpush.msra.mxu2 %v4964_v21  ;;  %v2641_v2 = vand.u32 4294901760, %v2640_v8  ;;  %v5178_v44 = vsub.f32 %v1513_v53, %v5152_v22  ;;  %v5180_v40 = vand.u32 4294901760, %v1511_v9  ;;  %v5656_v37 = vand.u32 4294901760, %v4824_v45 }
 0x162   :  { %2518 = vmatpush.msra.mxu1 %v4715_v47  ;;  %2624 = vmatpush.msra.mxu3 %v2623_v16  ;;  %v5655_v47 = vand.u32 4294901760, %v5112_v42  ;;  %v1462_v16 = vmax.f32 %v1457_v34, 0.0  ;;  %v2647_v8 = vand.u32 4294901760, %v2646_v0  ;;  %v5191_v53 = vsub.f32 %v1512_v6, %v5167_v4 }
 0x163   :  { %2471 = vmatpush.msra.mxu0 %v5654_v54  ;;  %2563 = vmatpush.msra.mxu2 %v4998_v36  ;;  %v5657_v34 = vand.u32 4294901760, %v4844_v3  ;;  %v2675_v0 = vand.u32 4294901760, %v5178_v44  ;;  %v5204_v6 = vsub.f32 %v1511_v9, %v5180_v40  ;;  %v5658_v3 = vand.u32 4294901760, %v4858_v13 }
 0x164   :  { %v2652_v15 = vsub.f32 %v5112_v42, %v5655_v47  ;;  %2520 = vmatpush.msra.mxu1 %v4725_v33  ;;  %2630 = vmatpush.msra.mxu3 %v2629_v50  ;;  %v2658_v33 = vsub.f32 %v5135_v11, %v2657_v58  ;;  %v2669_v50 = vand.u32 4294901760, %v5165_v18  ;;  %v5659_v47 = vand.u32 4294901760, %v4873_v10 }
 0x165   :  { %2475 = vmatpush.msra.mxu0 %v5656_v37  ;;  %2565 = vmatpush.msra.mxu2 %v5019_v26  ;;  %v2676_v9 = vsub.f32 %v5178_v44, %v2675_v0  ;;  %v5660_v37 = vand.u32 4294901760, %v4896_v55 }
 0x166   :  { %2522 = vmatpush.msra.mxu1 %v4730_v20  ;;  %2636 = vmatpush.msra.mxu3 %v2635_v41  ;;  %v2653_v45 = vand.u32 4294901760, %v2652_v15  ;;  %v5197_v20 = vand.u32 4294901760, %v1462_v16  ;;  %v2664_v41 = vsub.f32 %v5150_v62, %v2663_v49  ;;  %v2670_v54 = vsub.f32 %v5165_v18, %v2669_v50 }
 0x167   :  { %2479 = vmatpush.msra.mxu0 %v5657_v34  ;;  %2567 = vmatpush.msra.mxu2 %v5031_v23  ;;  %v2687_v15 = vand.u32 4294901760, %v5204_v6  ;;  %v2677_v55 = vand.u32 4294901760, %v2676_v9  ;;  %v5663_v34 = vand.u32 4294901760, %v4974_v32 }
 0x168   :  { %2524 = vmatpush.msra.mxu1 %v4751_v30  ;;  %2642 = vmatpush.msra.mxu3 %v2641_v2  ;;  %v2659_v30 = vand.u32 4294901760, %v2658_v33  ;;  %v2681_v2 = vand.u32 4294901760, %v5191_v53  ;;  %v5218_v13 = vsub.f32 %v1462_v16, %v5197_v20  ;;  %v2671_v10 = vand.u32 4294901760, %v2670_v54  ;;  %v5674_v54 = vld [vmem:[#allocation3_spill] sm:$0xff] }
 0x169   :  { %2483 = vmatpush.msra.mxu0 %v5658_v3  ;;  %2569 = vmatpush.msra.mxu2 %v5043_v46  ;;  %v5661_v16 = vand.u32 4294901760, %v4912_v27  ;;  %v5662_v33 = vand.u32 4294901760, %v4925_v1  ;;  %v5677_v9 = vand.u32 4294901760, %v5674_v54 }
 0x16a   :  { %2526 = vmatpush.msra.mxu1 %v4764_v60  ;;  %2648 = vmatpush.msra.mxu3 %v2647_v8  ;;  %v2665_v60 = vand.u32 4294901760, %v2664_v41  ;;  %v2588_v8 = vand.u32 4294901760, %v5218_v13  ;;  %v5671_v41 = vld [vmem:[#allocation4_spill] sm:$0xff] }
 0x16b   :  { %2487 = vmatpush.msra.mxu0 %v5659_v47  ;;  %2571 = vmatpush.msra.mxu2 %v5072_v59  ;;  %v5675_v47 = vand.u32 4294901760, %v5671_v41 }
 0x16c   :  { %2528 = vmatpush.msra.mxu1 %v4777_v43  ;;  %2654 = vmatpush.msra.mxu3 %v2653_v45  ;;  %v2682_v43 = vsub.f32 %v5191_v53, %v2681_v2  ;;  %v5664_v45 = vand.u32 4294901760, %v4982_v52  ;;  %v5667_v52 = vld [vmem:[#allocation8_spill] sm:$0xff] }
 0x16d   :  { %2491 = vmatpush.msra.mxu0 %v5660_v37  ;;  %2573 = vmatpush.msra.mxu2 %v5082_v14  ;;  %v5678_v37 = vand.u32 4294901760, %v5038_v61 }
 0x16e   :  { %2530 = vmatpush.msra.mxu1 %v4795_v63  ;;  %2660 = vmatpush.msra.mxu3 %v2659_v30  ;;  %v2688_v63 = vsub.f32 %v5204_v6, %v2687_v15  ;;  %v2683_v27 = vand.u32 4294901760, %v2682_v43  ;;  %v5673_v30 = vld [vmem:[#allocation2_spill] sm:$0xff] }
 0x16f   :  { %2495 = vmatpush.msra.mxu0 %v5661_v16  ;;  %2575 = vmatpush.msra.mxu2 %v5107_v24 }
 0x170   :  { %2532 = vmatpush.msra.mxu1 %v4810_v51  ;;  %2666 = vmatpush.msra.mxu3 %v2665_v60  ;;  %v2589_v51 = vsub.f32 %v5218_v13, %v2588_v8  ;;  %v2689_v1 = vand.u32 4294901760, %v2688_v63  ;;  %v5676_v60 = vld [vmem:[#allocation9_spill] sm:$0xff] }
 0x171   :  { %2499 = vmatpush.msra.mxu0 %v5662_v33  ;;  %2577 = vmatpush.msra.mxu2 %v5122_v35 }
 0x172   :  { %2534 = vmatpush.msra.mxu1 %v4826_v31  ;;  %2672 = vmatpush.msra.mxu3 %v2671_v10  ;;  %v5665_v31 = vand.u32 4294901760, %v5016_v48  ;;  %v2590_v32 = vand.u32 4294901760, %v2589_v51  ;;  %v5668_v48 = vld [vmem:[#allocation10_spill] sm:$0xff] }
 0x173   :  { %2503 = vmatpush.msra.mxu0 %v5663_v34  ;;  %2579 = vmatpush.msra.mxu2 %v5137_v17  ;;  %v5672_v3 = vand.u32 4294901760, %v5668_v48 }
 0x174   :  { %2536 = vmatpush.msra.mxu1 %v4833_v19  ;;  %2678 = vmatpush.msra.mxu3 %v2677_v55  ;;  %v5666_v19 = vld [vmem:[#allocation5_spill] sm:$0xff] }
 0x175   :  { %2507 = vmatpush.msra.mxu0 %v5664_v45  ;;  %2581 = vmatpush.msra.mxu2 %v5152_v22 }
 0x176   :  { %2538 = vmatpush.msra.mxu1 %v4860_v5  ;;  %2684 = vmatpush.msra.mxu3 %v2683_v27  ;;  %v5669_v5 = vand.u32 4294901760, %v5666_v19 }
 0x177   :  { %2511 = vmatpush.msra.mxu0 %v5665_v31  ;;  %2583 = vmatpush.msra.mxu2 %v5167_v4 }
 0x178   :  { %2540 = vmatpush.msra.mxu1 %v4879_v38  ;;  %2690 = vmatpush.msra.mxu3 %v2689_v1  ;;  %v5670_v38 = vld [vmem:[#allocation7_spill] sm:$0xff] }
 0x179   :  { %2513 = vmatmul.f32.vlgmr.msra.gmra.mxu0 %v4899_v57  ;;  %2692 = vmatmul.f32.vlgmr.msra.gmra.mxu3 %v5197_v20 }
 0x17a   :  { %2698 = vmatpush.msrb.mxu0 %v5666_v19  ;;  %2859 = vmatpush.msrb.mxu3 %v4886_v56 }
 0x17b   :  { %2542 = vmatpush.msra.mxu1 %v5667_v52  ;;  %2585 = vmatpush.msra.mxu2 %v5180_v40 }
 0x17c   :  { %2591 = vmatmul.f32.vlgmr.msra.gmra.mxu2 %v2590_v32  ;;  %2701 = vmatpush.msrb.mxu0 %v5668_v48 }
 0x17d   :  { %2792 = vmatpush.msrb.mxu2 %v5669_v5  ;;  %2861 = vmatpush.msrb.mxu3 %v4917_v7 }
 0x17e   :  { %2544 = vmatpush.msra.mxu1 %v5670_v38  ;;  %2704 = vmatpush.msrb.mxu0 %v5671_v41 }
 0x17f   :  { %2796 = vmatpush.msrb.mxu2 %v5672_v3  ;;  %2863 = vmatpush.msrb.mxu3 %v4953_v28 }
 0x180   :  { %2546 = vmatpush.msra.mxu1 %v5673_v30  ;;  %2707 = vmatpush.msrb.mxu0 %v5674_v54 }
 0x181   :  { %2800 = vmatpush.msrb.mxu2 %v5675_v47  ;;  %2865 = vmatpush.msrb.mxu3 %v4964_v21 }
 0x182   :  { %2548 = vmatpush.msra.mxu1 %v5676_v60  ;;  %2710 = vmatpush.msrb.mxu0 %v5038_v61  ;;  %v5681_v61 = vand.u32 4294901760, %v5080_v39 }
 0x183   :  { %2550 = vmatmul.f32.vlgmr.msra.gmra.mxu1 %v4899_v57  ;;  %2804 = vmatpush.msrb.mxu2 %v5677_v9  ;;  %v5679_v57 = vand.u32 4294901760, %v5054_v25 }
 0x184   :  { %2751 = vmatpush.msrb.mxu1 %v4886_v56  ;;  %2867 = vmatpush.msrb.mxu3 %v4998_v36  ;;  %v5680_v56 = vand.u32 4294901760, %v5068_v12 }
 0x185   :  { %2713 = vmatpush.msrb.mxu0 %v5054_v25  ;;  %2808 = vmatpush.msrb.mxu2 %v5678_v37 }
 0x186   :  { %2753 = vmatpush.msrb.mxu1 %v4917_v7  ;;  %2869 = vmatpush.msrb.mxu3 %v5019_v26  ;;  %v5682_v7 = vand.u32 4294901760, %v5105_v29 }
 0x187   :  { %2716 = vmatpush.msrb.mxu0 %v5068_v12  ;;  %2812 = vmatpush.msrb.mxu2 %v5679_v57  ;;  %v1763_v12 = vpop.f32.mrf.mxu3 }
 0x188   :  { %2755 = vmatpush.msrb.mxu1 %v4953_v28  ;;  %2871 = vmatpush.msrb.mxu3 %v5031_v23  ;;  %v5683_v28 = vand.u32 4294901760, %v5112_v42 }
 0x189   :  { %2719 = vmatpush.msrb.mxu0 %v5080_v39  ;;  %2816 = vmatpush.msrb.mxu2 %v5680_v56 }
 0x18a   :  { %2757 = vmatpush.msrb.mxu1 %v4964_v21  ;;  %2873 = vmatpush.msrb.mxu3 %v5043_v46 }
 0x18b   :  { %2722 = vmatpush.msrb.mxu0 %v5105_v29  ;;  %2820 = vmatpush.msrb.mxu2 %v5681_v61 }
 0x18c   :  { %2759 = vmatpush.msrb.mxu1 %v4998_v36  ;;  %2875 = vmatpush.msrb.mxu3 %v5072_v59 }
 0x18d   :  { %2725 = vmatpush.msrb.mxu0 %v5112_v42  ;;  %2824 = vmatpush.msrb.mxu2 %v5682_v7 }
 0x18e   :  { %2761 = vmatpush.msrb.mxu1 %v5019_v26  ;;  %2877 = vmatpush.msrb.mxu3 %v5082_v14  ;;  %v1569_v26 = vpop.f32.mrf.mxu0 }
 0x18f   :  { %2728 = vmatpush.msrb.mxu0 %v5135_v11  ;;  %2828 = vmatpush.msrb.mxu2 %v5683_v28 }
 0x190   :  { %2763 = vmatpush.msrb.mxu1 %v5031_v23  ;;  %2879 = vmatpush.msrb.mxu3 %v5107_v24  ;;  %v2900_v23 = vld [vmem:[%s5362_s4] ss:$0 sm:$0xff] }
 0x191   :  { %2731 = vmatpush.msrb.mxu0 %v5150_v62  ;;  %2832 = vmatpush.msrb.mxu2 %v2657_v58  ;;  %v1570_v21 = vadd.f32 %v2900_v23, %v1569_v26 }
 0x192   :  { %2765 = vmatpush.msrb.mxu1 %v5043_v46  ;;  %2881 = vmatpush.msrb.mxu3 %v5122_v35  ;;  %v1724_v46 = vpop.f32.mrf.mxu2 }
 0x193   :  { %2734 = vmatpush.msrb.mxu0 %v5165_v18  ;;  %2836 = vmatpush.msrb.mxu2 %v2663_v49 }
 0x194   :  { %2767 = vmatpush.msrb.mxu1 %v5072_v59  ;;  %2883 = vmatpush.msrb.mxu3 %v5137_v17  ;;  %v1670_v59 = vpop.f32.mrf.mxu1 }
 0x195   :  { %2737 = vmatpush.msrb.mxu0 %v5178_v44  ;;  %2840 = vmatpush.msrb.mxu2 %v2669_v50  ;;  %v1671_v36 = vadd.f32 %v1670_v59, %v1570_v21 }
 0x196   :  { %2769 = vmatpush.msrb.mxu1 %v5082_v14  ;;  %2885 = vmatpush.msrb.mxu3 %v5152_v22  ;;  %v1832_v39 = vpop.f32.mrf.mxu0 }
 0x197   :  { %2740 = vmatpush.msrb.mxu0 %v5191_v53  ;;  %2844 = vmatpush.msrb.mxu2 %v2675_v0  ;;  %v1725_v25 = vadd.f32 %v1724_v46, %v1671_v36 }
 0x198   :  { %2771 = vmatpush.msrb.mxu1 %v5107_v24  ;;  %2887 = vmatpush.msrb.mxu3 %v5167_v4 }
 0x199   :  { %2743 = vmatpush.msrb.mxu0 %v5204_v6  ;;  %2848 = vmatpush.msrb.mxu2 %v2681_v2  ;;  %v1764_v14 = vadd.f32 %v1763_v12, %v1725_v25 }
 0x19a   :  { %2773 = vmatpush.msrb.mxu1 %v5122_v35  ;;  %2889 = vmatpush.msrb.mxu3 %v5180_v40  ;;  %v1910_v42 = vpop.f32.mrf.mxu2 }
 0x19b   :  { %2746 = vmatmul.f32.vlgmr.msrb.gmra.mxu0 %v5218_v13  ;;  %2891 = vmatmul.f32.vlgmr.msrb.gmra.mxu3 %v5197_v20  ;;  %v1833_v29 = vadd.f32 %v1832_v39, %v1764_v14 }
 0x19c   :  { %2775 = vmatpush.msrb.mxu1 %v5137_v17  ;;  %2852 = vmatpush.msrb.mxu2 %v2687_v15  ;;  %v1869_v62 = vpop.f32.mrf.mxu1 }
 0x19d   :  { %2854 = vmatmul.f32.vlgmr.msrb.gmra.mxu2 %v5197_v20  ;;  %v1870_v24 = vadd.f32 %v1869_v62, %v1833_v29 }
 0x19e   :  { %2777 = vmatpush.msrb.mxu1 %v5152_v22 }
 0x19f   :  { %v1911_v35 = vadd.f32 %v1910_v42, %v1870_v24 }
 0x1a0   :  { %2779 = vmatpush.msrb.mxu1 %v5167_v4 }
 0x1a2   :  { %2781 = vmatpush.msrb.mxu1 %v5180_v40  ;;  %v2011_v40 = vpop.f32.mrf.mxu3 }
 0x1a3   :  { %2785 = vmatmul.f32.vlgmr.msrb.gmra.mxu1 %v2588_v8  ;;  %v2012_v17 = vadd.f32 %v2011_v40, %v1911_v35 }
 0x1b2   :  { %v2065_v11 = vpop.f32.mrf.mxu0 }
 0x1b3   :  { %v2066_v58 = vadd.f32 %v2065_v11, %v2012_v17 }
 0x1b8   :  { %v2210_v44 = vpop.f32.mrf.mxu3 }
 0x1bb   :  { %v2173_v4 = vpop.f32.mrf.mxu2 }
 0x1bc   :  { %v2104_v22 = vpop.f32.mrf.mxu1 }
 0x1bd   :  { %v2105_v18 = vadd.f32 %v2104_v22, %v2066_v58 }
 0x1bf   :  { %v2174_v49 = vadd.f32 %v2173_v4, %v2105_v18 }
 0x1c1   :  { %v2211_v53 = vadd.f32 %v2210_v44, %v2174_v49 }
 0x1d4   :  { %v2251_v50 = vpop.f32.mrf.mxu0 }
 0x1d5   :  { %v2252_v0 = vadd.f32 %v2251_v50, %v2211_v53 }
 0x1da   :  { %v2445_v15 = vpop.f32.mrf.mxu3 }
 0x1dd   :  { %v2406_v2 = vpop.f32.mrf.mxu2 }
 0x1de   :  { %v2352_v20 = vpop.f32.mrf.mxu1 }
 0x1df   :  { %v2353_v6 = vadd.f32 %v2352_v20, %v2252_v0 }
 0x1e1   :  { %v2407_v13 = vadd.f32 %v2406_v2, %v2353_v6 }
 0x1e3   :  { %v2446_v43 = vadd.f32 %v2445_v15, %v2407_v13 }
 0x1f6   :  { %v2514_v10 = vpop.f32.mrf.mxu0 }
 0x1f7   :  { %v2515_v8 = vadd.f32 %v2514_v10, %v2446_v43 }
 0x1fc   :  { %v2693_v27 = vpop.f32.mrf.mxu3 }
 0x1ff   :  { %v2592_v63 = vpop.f32.mrf.mxu2 }
 0x200   :  { %v2551_v16 = vpop.f32.mrf.mxu1 }
 0x201   :  { %v2552_v55 = vadd.f32 %v2551_v16, %v2515_v8 }
 0x203   :  { %v2593_v33 = vadd.f32 %v2592_v63, %v2552_v55 }
 0x205   :  { %v2694_v51 = vadd.f32 %v2693_v27, %v2593_v33 }
 0x218   :  { %v2747_v34 = vpop.f32.mrf.mxu0 }
 0x219   :  { %v2748_v1 = vadd.f32 %v2747_v34, %v2694_v51 }
 0x21e   :  { %v2892_v52 = vpop.f32.mrf.mxu3 }
 0x220   :  { %v2786_v45 = vpop.f32.mrf.mxu1  ;;  %v2855_v32 = vpop.f32.mrf.mxu2 }
 0x221   :  { %v2787_v31 = vadd.f32 %v2786_v45, %v2748_v1 }
 0x223   :  { %v2856_v19 = vadd.f32 %v2855_v32, %v2787_v31 }
 0x225   :  { %v2893_v48 = vadd.f32 %v2892_v52, %v2856_v19 }
 0x227   :  { %2895 = vst [vmem:[%s5363_s5] sm:$0xf] %v2893_v48 }

</bundles_post_ra>
